<compile_context>
chip_gen: v5e
topology: v5e:2x2
jax: 0.10.0
libtpu: 0.0.40
codegen_flags: <defaults>
</compile_context>

<pallas_src>
import jax
import jax.numpy as jnp
import numpy as np
from jax.experimental import pallas as pl
from jax.experimental.pallas import tpu as pltpu

D_MODEL = 128
N_HEADS = 8
HEAD_DIM = D_MODEL // N_HEADS
D_FF = 2048                    # PyTorch TransformerEncoderLayer default dim_feedforward
FF_CHUNK = 512                 # D_FF streamed in 4 chunks -> weight DMA overlaps compute
LN_EPS = 1e-5
CLS_PAD = 128                  # lane-dense classifier width (real classes sliced outside)


def _layernorm(x, gamma, beta):
    mu = jnp.mean(x, axis=-1, keepdims=True)
    var = jnp.mean((x - mu) ** 2, axis=-1, keepdims=True)   # biased var, matches PyTorch
    return (x - mu) * jax.lax.rsqrt(var + LN_EPS) * gamma + beta


def transformer_kernel(
    x_ref,
    w_enc_ref, b_enc_ref,
    w_qkv_ref, b_qkv_ref,
    w_ao_ref, b_ao_ref,
    g1_ref, be1_ref,
    w_ff1_ref, b_ff1_ref,        # streamed: (128, FF_CHUNK) bf16, (1, FF_CHUNK) f32
    w_ff2_ref,                   # streamed: (FF_CHUNK, 128) bf16
    b_ff2_ref,
    g2_ref, be2_ref,
    w_cls_ref, b_cls_ref,        # lane-padded to (128, CLS_PAD) / (1, CLS_PAD)
    o_ref,                       # (B, CLS_PAD)
    h1_ref, acc_ref,             # VMEM scratch, persists across grid steps
):
    f32 = jnp.float32
    step = pl.program_id(0)

    # ---- once, on the first FF chunk: encoder + batch-mixing self-attention + norm1
    @pl.when(step == 0)
    def _():
        x = x_ref[...]
        h = jnp.dot(x, w_enc_ref[...], preferred_element_type=f32) + b_enc_ref[...]
        qkv = jnp.dot(h, w_qkv_ref[...], preferred_element_type=f32) + b_qkv_ref[...]
        B = h.shape[0]
        scale = 1.0 / (HEAD_DIM ** 0.5)
        # heads-as-batch layout (H, B, Dh); softmax scale folded into q
        qh = (qkv[:, 0:D_MODEL] * scale).reshape(B, N_HEADS, HEAD_DIM).transpose(1, 0, 2)
        kh = qkv[:, D_MODEL:2 * D_MODEL].reshape(B, N_HEADS, HEAD_DIM).transpose(1, 0, 2)
        vh = qkv[:, 2 * D_MODEL:3 * D_MODEL].reshape(B, N_HEADS, HEAD_DIM).transpose(1, 0, 2)
        s = jnp.einsum("hqd,hkd->hqk", qh, kh, preferred_element_type=f32)    # (H, B, B)
        s = s - jnp.max(s, axis=-1, keepdims=True)
        p = jnp.exp(s)
        p = p / jnp.sum(p, axis=-1, keepdims=True)
        attn = jnp.einsum("hqk,hkd->hqd", p, vh, preferred_element_type=f32)  # (H, B, Dh)
        attn = attn.transpose(1, 0, 2).reshape(B, D_MODEL)
        attn = jnp.dot(attn, w_ao_ref[...], preferred_element_type=f32) + b_ao_ref[...]
        h1_ref[...] = _layernorm(h + attn, g1_ref[...], be1_ref[...])
        acc_ref[...] = jnp.zeros_like(acc_ref)

    # ---- streamed feed-forward chunk: relu(h1 @ W1[:, c] + b1[c]) @ W2[c, :]
    h1 = h1_ref[...]
    ff = jnp.dot(h1, w_ff1_ref[...].astype(f32), preferred_element_type=f32) + b_ff1_ref[...]
    ff = jnp.maximum(ff, 0.0)
    acc_ref[...] += jnp.dot(ff, w_ff2_ref[...].astype(f32), preferred_element_type=f32)

    # ---- once, on the last chunk: residual + norm2 + lane-padded classifier
    @pl.when(step == pl.num_programs(0) - 1)
    def _():
        h2 = _layernorm(h1 + acc_ref[...] + b_ff2_ref[...], g2_ref[...], be2_ref[...])
        o_ref[...] = jnp.dot(h2, w_cls_ref[...], preferred_element_type=f32) + b_cls_ref[...]


def simple_transformer_forward(x, params, num_classes):
    """x: (B, input_size) f32. Returns logits (B, num_classes)."""
    B, input_size = x.shape

    def const(shape):
        return pl.BlockSpec(shape, lambda k: (0, 0))

    in_specs = [
        const((B, input_size)),
        const((input_size, D_MODEL)), const((1, D_MODEL)),
        const((D_MODEL, 3 * D_MODEL)), const((1, 3 * D_MODEL)),
        const((D_MODEL, D_MODEL)), const((1, D_MODEL)),
        const((1, D_MODEL)), const((1, D_MODEL)),
        pl.BlockSpec((D_MODEL, FF_CHUNK), lambda k: (0, k)),   # w_ff1 column tiles
        pl.BlockSpec((1, FF_CHUNK), lambda k: (0, k)),         # b_ff1 tiles
        pl.BlockSpec((FF_CHUNK, D_MODEL), lambda k: (k, 0)),   # w_ff2 row tiles
        const((1, D_MODEL)),
        const((1, D_MODEL)), const((1, D_MODEL)),
        const((D_MODEL, CLS_PAD)), const((1, CLS_PAD)),
    ]
    args = [
        x,
        params["w_enc"], params["b_enc"],
        params["w_qkv"], params["b_qkv"],
        params["w_ao"], params["b_ao"],
        params["g1"], params["be1"],
        params["w_ff1"], params["b_ff1"],
        params["w_ff2"], params["b_ff2"],
        params["g2"], params["be2"],
        params["w_cls"], params["b_cls"],
    ]
    out = pl.pallas_call(
        transformer_kernel,
        out_shape=jax.ShapeDtypeStruct((B, CLS_PAD), jnp.float32),
        grid_spec=pltpu.PrefetchScalarGridSpec(
            num_scalar_prefetch=0,
            grid=(D_FF // FF_CHUNK,),
            in_specs=in_specs,
            out_specs=pl.BlockSpec((B, CLS_PAD), lambda k: (0, 0)),
            scratch_shapes=[pltpu.VMEM((B, D_MODEL), jnp.float32),   # h1 (post-norm1)
                            pltpu.VMEM((B, D_MODEL), jnp.float32)],  # FF accumulator
        ),
        compiler_params=pltpu.CompilerParams(dimension_semantics=("arbitrary",)),
    )(*args)
    return out[:, :num_classes]


# ---------------- deterministic parameter init (PyTorch-style uniform) ----------------
def _linear_init(key, fan_in, fan_out):
    bound = 1.0 / np.sqrt(fan_in)
    kw, kb = jax.random.split(key)
    w = jax.random.uniform(kw, (fan_out, fan_in), jnp.float32, -bound, bound)  # torch (out, in)
    b = jax.random.uniform(kb, (fan_out,), jnp.float32, -bound, bound)
    return w, b


def init_params(key, input_size, num_classes):
    ks = jax.random.split(key, 6)
    w_enc, b_enc = _linear_init(ks[0], input_size, D_MODEL)
    w_qkv, b_qkv = _linear_init(ks[1], D_MODEL, 3 * D_MODEL)        # MHA in_proj
    w_ao, b_ao = _linear_init(ks[2], D_MODEL, D_MODEL)              # MHA out_proj
    w_ff1, b_ff1 = _linear_init(ks[3], D_MODEL, D_FF)
    w_ff2, b_ff2 = _linear_init(ks[4], D_FF, D_MODEL)
    w_cls, b_cls = _linear_init(ks[5], D_MODEL, num_classes)

    def t(w):   # (out, in) -> (in, out) so kernel does x @ W
        return jnp.asarray(w).T

    def row(b):  # biases as (1, out) for 2-D broadcast in VMEM
        return jnp.asarray(b).reshape(1, -1)

    # lane-pad classifier to CLS_PAD so the kernel stores a lane-dense output
    w_cls_p = jnp.zeros((D_MODEL, CLS_PAD), jnp.float32).at[:, :num_classes].set(t(w_cls))
    b_cls_p = jnp.zeros((1, CLS_PAD), jnp.float32).at[:, :num_classes].set(row(b_cls))

    return {
        "w_enc": t(w_enc), "b_enc": row(b_enc),
        "w_qkv": t(w_qkv), "b_qkv": row(b_qkv),
        "w_ao": t(w_ao), "b_ao": row(b_ao),
        "g1": jnp.ones((1, D_MODEL), jnp.float32), "be1": jnp.zeros((1, D_MODEL), jnp.float32),
        # big FF weights live in HBM as bf16 (halves the dominant weight DMA);
        # the kernel upcasts and accumulates in f32.
        "w_ff1": t(w_ff1).astype(jnp.bfloat16), "b_ff1": row(b_ff1),
        "w_ff2": t(w_ff2).astype(jnp.bfloat16), "b_ff2": row(b_ff2),
        "g2": jnp.ones((1, D_MODEL), jnp.float32), "be2": jnp.zeros((1, D_MODEL), jnp.float32),
        "w_cls": w_cls_p, "b_cls": b_cls_p,
    }


# ---------------- pure-JAX reference (same math, no Pallas) ----------------
def reference_forward(x, p, num_classes):
    w_ff1 = p["w_ff1"].astype(jnp.float32)
    w_ff2 = p["w_ff2"].astype(jnp.float32)
    h = x @ p["w_enc"] + p["b_enc"]
    qkv = h @ p["w_qkv"] + p["b_qkv"]
    q, k, v = qkv[:, :D_MODEL], qkv[:, D_MODEL:2 * D_MODEL], qkv[:, 2 * D_MODEL:]
    B = x.shape[0]
    qh = q.reshape(B, N_HEADS, HEAD_DIM).transpose(1, 0, 2)
    kh = k.reshape(B, N_HEADS, HEAD_DIM).transpose(1, 0, 2)
    vh = v.reshape(B, N_HEADS, HEAD_DIM).transpose(1, 0, 2)
    sc = jnp.einsum("hqd,hkd->hqk", qh, kh) / np.sqrt(HEAD_DIM)
    pr = jax.nn.softmax(sc, axis=-1)
    attn = jnp.einsum("hqk,hkd->hqd", pr, vh).transpose(1, 0, 2).reshape(B, D_MODEL)
    attn = attn @ p["w_ao"] + p["b_ao"]
    h1 = _layernorm(h + attn, p["g1"], p["be1"])
    ff = jax.nn.relu(h1 @ w_ff1 + p["b_ff1"]) @ w_ff2 + p["b_ff2"]
    h2 = _layernorm(h1 + ff, p["g2"], p["be2"])
    return (h2 @ p["w_cls"] + p["b_cls"])[:, :num_classes]


if __name__ == "__main__":
    batch, input_size, num_classes = 8, 32, 10
    key = jax.random.PRNGKey(0)
    kx, kp = jax.random.split(key)
    x = jax.random.normal(kx, (batch, input_size), jnp.float32)
    params = init_params(kp, input_size, num_classes)

    out = jax.block_until_ready(simple_transformer_forward(x, params, num_classes))
    ref = jax.block_until_ready(reference_forward(x, params, num_classes))
    np.testing.assert_allclose(np.asarray(out), np.asarray(ref), rtol=1e-3, atol=1e-3)

    print("KERNEL_OK")
</pallas_src>

<mosaic_0001>
module attributes {stable_mosaic.version = 11 : i64} {
  func.func @transformer_kernel(%arg0: i32, %arg1: memref<8x32xf32, #tpu.memory_space<vmem>>, %arg2: memref<32x128xf32, #tpu.memory_space<vmem>>, %arg3: memref<1x128xf32, #tpu.memory_space<vmem>>, %arg4: memref<128x384xf32, #tpu.memory_space<vmem>>, %arg5: memref<1x384xf32, #tpu.memory_space<vmem>>, %arg6: memref<128x128xf32, #tpu.memory_space<vmem>>, %arg7: memref<1x128xf32, #tpu.memory_space<vmem>>, %arg8: memref<1x128xf32, #tpu.memory_space<vmem>>, %arg9: memref<1x128xf32, #tpu.memory_space<vmem>>, %arg10: memref<128x512xbf16, #tpu.memory_space<vmem>>, %arg11: memref<1x512xf32, #tpu.memory_space<vmem>>, %arg12: memref<512x128xbf16, #tpu.memory_space<vmem>>, %arg13: memref<1x128xf32, #tpu.memory_space<vmem>>, %arg14: memref<1x128xf32, #tpu.memory_space<vmem>>, %arg15: memref<1x128xf32, #tpu.memory_space<vmem>>, %arg16: memref<128x128xf32, #tpu.memory_space<vmem>>, %arg17: memref<1x128xf32, #tpu.memory_space<vmem>>, %arg18: memref<8x128xf32, #tpu.memory_space<vmem>>, %arg19: memref<8x128xf32, #tpu.memory_space<vmem>>, %arg20: memref<8x128xf32, #tpu.memory_space<vmem>>) attributes {dimension_semantics = [#tpu.dimension_semantics<arbitrary>], iteration_bounds = array<i64: 4>, scalar_prefetch = 0 : i64, scratch_operands = 2 : i64, tpu.core_type = #tpu.core_type<tc>, window_params = [{pipeline_mode = #tpu.pipeline_mode<synchronous>, transform_indices = @transform_0, window_bounds = array<i64: 8, 32>}, {pipeline_mode = #tpu.pipeline_mode<synchronous>, transform_indices = @transform_1, window_bounds = array<i64: 32, 128>}, {pipeline_mode = #tpu.pipeline_mode<synchronous>, transform_indices = @transform_2, window_bounds = array<i64: 1, 128>}, {pipeline_mode = #tpu.pipeline_mode<synchronous>, transform_indices = @transform_3, window_bounds = array<i64: 128, 384>}, {pipeline_mode = #tpu.pipeline_mode<synchronous>, transform_indices = @transform_4, window_bounds = array<i64: 1, 384>}, {pipeline_mode = #tpu.pipeline_mode<synchronous>, transform_indices = @transform_5, window_bounds = array<i64: 128, 128>}, {pipeline_mode = #tpu.pipeline_mode<synchronous>, transform_indices = @transform_6, window_bounds = array<i64: 1, 128>}, {pipeline_mode = #tpu.pipeline_mode<synchronous>, transform_indices = @transform_7, window_bounds = array<i64: 1, 128>}, {pipeline_mode = #tpu.pipeline_mode<synchronous>, transform_indices = @transform_8, window_bounds = array<i64: 1, 128>}, {transform_indices = @transform_9, window_bounds = array<i64: 128, 512>}, {transform_indices = @transform_10, window_bounds = array<i64: 1, 512>}, {transform_indices = @transform_11, window_bounds = array<i64: 512, 128>}, {pipeline_mode = #tpu.pipeline_mode<synchronous>, transform_indices = @transform_12, window_bounds = array<i64: 1, 128>}, {pipeline_mode = #tpu.pipeline_mode<synchronous>, transform_indices = @transform_13, window_bounds = array<i64: 1, 128>}, {pipeline_mode = #tpu.pipeline_mode<synchronous>, transform_indices = @transform_14, window_bounds = array<i64: 1, 128>}, {pipeline_mode = #tpu.pipeline_mode<synchronous>, transform_indices = @transform_15, window_bounds = array<i64: 128, 128>}, {pipeline_mode = #tpu.pipeline_mode<synchronous>, transform_indices = @transform_16, window_bounds = array<i64: 1, 128>}, {pipeline_mode = #tpu.pipeline_mode<synchronous>, transform_indices = @transform_17, window_bounds = array<i64: 8, 128>}]} {
    %c0_i32 = arith.constant 0 : i32
    %0 = arith.cmpi eq, %arg0, %c0_i32 : i32
    %1 = arith.extui %0 : i1 to i32
    %c0_i32_0 = arith.constant 0 : i32
    %2 = arith.cmpi ne, %1, %c0_i32_0 : i32
    scf.if %2 {
      %c0_15 = arith.constant 0 : index
      %c0_16 = arith.constant 0 : index
      %21 = vector.load %arg1[%c0_15, %c0_16] : memref<8x32xf32, #tpu.memory_space<vmem>>, vector<8x32xf32>
      %c0_17 = arith.constant 0 : index
      %c0_18 = arith.constant 0 : index
      %22 = vector.load %arg2[%c0_17, %c0_18] : memref<32x128xf32, #tpu.memory_space<vmem>>, vector<32x128xf32>
      %cst_19 = arith.constant dense<0.000000e+00> : vector<8x128xf32>
      %23 = tpu.matmul %21, %22, %cst_19 {dimension_numbers = #tpu.dot_dimension_numbers<[1], [0], [0], [1], [0, 0, 1, 1], [], []>} : vector<8x32xf32>, vector<32x128xf32>, vector<8x128xf32> -> vector<8x128xf32>
      %c0_20 = arith.constant 0 : index
      %c0_21 = arith.constant 0 : index
      %24 = vector.load %arg3[%c0_20, %c0_21] : memref<1x128xf32, #tpu.memory_space<vmem>>, vector<1x128xf32>
      %25 = vector.broadcast %24 : vector<1x128xf32> to vector<8x128xf32>
      %26 = arith.addf %23, %25 : vector<8x128xf32>
      %c0_22 = arith.constant 0 : index
      %c0_23 = arith.constant 0 : index
      %27 = vector.load %arg4[%c0_22, %c0_23] : memref<128x384xf32, #tpu.memory_space<vmem>>, vector<128x384xf32>
      %cst_24 = arith.constant dense<0.000000e+00> : vector<8x384xf32>
      %28 = tpu.matmul %26, %27, %cst_24 {dimension_numbers = #tpu.dot_dimension_numbers<[1], [0], [0], [1], [0, 0, 1, 1], [], []>} : vector<8x128xf32>, vector<128x384xf32>, vector<8x384xf32> -> vector<8x384xf32>
      %c0_25 = arith.constant 0 : index
      %c0_26 = arith.constant 0 : index
      %29 = vector.load %arg5[%c0_25, %c0_26] : memref<1x384xf32, #tpu.memory_space<vmem>>, vector<1x384xf32>
      %30 = vector.broadcast %29 : vector<1x384xf32> to vector<8x384xf32>
      %31 = arith.addf %28, %30 : vector<8x384xf32>
      %32 = vector.extract_strided_slice %31 {offsets = [0, 0], sizes = [8, 128], strides = [1, 1]} : vector<8x384xf32> to vector<8x128xf32>
      %cst_27 = arith.constant 2.500000e-01 : f32
      %33 = vector.broadcast %cst_27 : f32 to vector<8x128xf32>
      %34 = arith.mulf %32, %33 : vector<8x128xf32>
      %35 = vector.shape_cast %34 : vector<8x128xf32> to vector<8x8x16xf32>
      %36 = tpu.transpose %35, [1, 0, 2] : vector<8x8x16xf32> -> vector<8x8x16xf32>
      %37 = vector.extract_strided_slice %31 {offsets = [0, 128], sizes = [8, 128], strides = [1, 1]} : vector<8x384xf32> to vector<8x128xf32>
      %38 = vector.shape_cast %37 : vector<8x128xf32> to vector<8x8x16xf32>
      %39 = tpu.transpose %38, [1, 0, 2] : vector<8x8x16xf32> -> vector<8x8x16xf32>
      %40 = vector.extract_strided_slice %31 {offsets = [0, 256], sizes = [8, 128], strides = [1, 1]} : vector<8x384xf32> to vector<8x128xf32>
      %41 = vector.shape_cast %40 : vector<8x128xf32> to vector<8x8x16xf32>
      %42 = tpu.transpose %41, [1, 0, 2] : vector<8x8x16xf32> -> vector<8x8x16xf32>
      "tpu.trace_start"() <{level = 10 : i32, message = "hqd,hkd->hqk"}> : () -> ()
      %cst_28 = arith.constant dense<0.000000e+00> : vector<8x8x8xf32>
      %43 = tpu.matmul %36, %39, %cst_28 {dimension_numbers = #tpu.dot_dimension_numbers<[2], [2], [1], [1], [0, 0, 0, 1, 1, 1], [0], [0]>} : vector<8x8x16xf32>, vector<8x8x16xf32>, vector<8x8x8xf32> -> vector<8x8x8xf32>
      "tpu.trace_stop"() : () -> ()
      %cst_29 = arith.constant dense<0xFF800000> : vector<8x8xf32>
      %44 = vector.multi_reduction <maximumf>, %43, %cst_29 [2] : vector<8x8x8xf32> to vector<8x8xf32>
      %45 = vector.shape_cast %44 : vector<8x8xf32> to vector<8x8x1xf32>
      %46 = vector.broadcast %45 : vector<8x8x1xf32> to vector<8x8x8xf32>
      %47 = arith.subf %43, %46 : vector<8x8x8xf32>
      %48 = math.exp %47 : vector<8x8x8xf32>
      %cst_30 = arith.constant dense<0.000000e+00> : vector<8x8xf32>
      %49 = vector.multi_reduction <add>, %48, %cst_30 [2] : vector<8x8x8xf32> to vector<8x8xf32>
      %50 = vector.shape_cast %49 : vector<8x8xf32> to vector<8x8x1xf32>
      %51 = vector.broadcast %50 : vector<8x8x1xf32> to vector<8x8x8xf32>
      %52 = arith.divf %48, %51 : vector<8x8x8xf32>
      "tpu.trace_start"() <{level = 10 : i32, message = "hqk,hkd->hqd"}> : () -> ()
      %cst_31 = arith.constant dense<0.000000e+00> : vector<8x8x16xf32>
      %53 = tpu.matmul %52, %42, %cst_31 {dimension_numbers = #tpu.dot_dimension_numbers<[2], [1], [1], [2], [0, 0, 0, 1, 1, 2], [0], [0]>} : vector<8x8x8xf32>, vector<8x8x16xf32>, vector<8x8x16xf32> -> vector<8x8x16xf32>
      "tpu.trace_stop"() : () -> ()
      %54 = tpu.transpose %53, [1, 0, 2] : vector<8x8x16xf32> -> vector<8x8x16xf32>
      %55 = vector.shape_cast %54 : vector<8x8x16xf32> to vector<8x128xf32>
      %c0_32 = arith.constant 0 : index
      %c0_33 = arith.constant 0 : index
      %56 = vector.load %arg6[%c0_32, %c0_33] : memref<128x128xf32, #tpu.memory_space<vmem>>, vector<128x128xf32>
      %cst_34 = arith.constant dense<0.000000e+00> : vector<8x128xf32>
      %57 = tpu.matmul %55, %56, %cst_34 {dimension_numbers = #tpu.dot_dimension_numbers<[1], [0], [0], [1], [0, 0, 1, 1], [], []>} : vector<8x128xf32>, vector<128x128xf32>, vector<8x128xf32> -> vector<8x128xf32>
      %c0_35 = arith.constant 0 : index
      %c0_36 = arith.constant 0 : index
      %58 = vector.load %arg7[%c0_35, %c0_36] : memref<1x128xf32, #tpu.memory_space<vmem>>, vector<1x128xf32>
      %59 = vector.broadcast %58 : vector<1x128xf32> to vector<8x128xf32>
      %60 = arith.addf %57, %59 : vector<8x128xf32>
      %61 = arith.addf %26, %60 : vector<8x128xf32>
      %c0_37 = arith.constant 0 : index
      %c0_38 = arith.constant 0 : index
      %62 = vector.load %arg8[%c0_37, %c0_38] : memref<1x128xf32, #tpu.memory_space<vmem>>, vector<1x128xf32>
      %c0_39 = arith.constant 0 : index
      %c0_40 = arith.constant 0 : index
      %63 = vector.load %arg9[%c0_39, %c0_40] : memref<1x128xf32, #tpu.memory_space<vmem>>, vector<1x128xf32>
      %cst_41 = arith.constant dense<0.000000e+00> : vector<8xf32>
      %64 = vector.multi_reduction <add>, %61, %cst_41 [1] : vector<8x128xf32> to vector<8xf32>
      %65 = vector.shape_cast %64 : vector<8xf32> to vector<8x1xf32>
      %cst_42 = arith.constant 1.280000e+02 : f32
      %66 = vector.broadcast %cst_42 : f32 to vector<8x1xf32>
      %67 = arith.divf %65, %66 : vector<8x1xf32>
      %68 = vector.broadcast %67 : vector<8x1xf32> to vector<8x128xf32>
      %69 = arith.subf %61, %68 : vector<8x128xf32>
      %70 = arith.mulf %69, %69 : vector<8x128xf32>
      %cst_43 = arith.constant dense<0.000000e+00> : vector<8xf32>
      %71 = vector.multi_reduction <add>, %70, %cst_43 [1] : vector<8x128xf32> to vector<8xf32>
      %72 = vector.shape_cast %71 : vector<8xf32> to vector<8x1xf32>
      %cst_44 = arith.constant 1.280000e+02 : f32
      %73 = vector.broadcast %cst_44 : f32 to vector<8x1xf32>
      %74 = arith.divf %72, %73 : vector<8x1xf32>
      %75 = vector.broadcast %67 : vector<8x1xf32> to vector<8x128xf32>
      %76 = arith.subf %61, %75 : vector<8x128xf32>
      %cst_45 = arith.constant 9.99999974E-6 : f32
      %77 = vector.broadcast %cst_45 : f32 to vector<8x1xf32>
      %78 = arith.addf %74, %77 : vector<8x1xf32>
      %79 = math.rsqrt %78 : vector<8x1xf32>
      %80 = vector.broadcast %79 : vector<8x1xf32> to vector<8x128xf32>
      %81 = arith.mulf %76, %80 : vector<8x128xf32>
      %82 = vector.broadcast %62 : vector<1x128xf32> to vector<8x128xf32>
      %83 = arith.mulf %81, %82 : vector<8x128xf32>
      %84 = vector.broadcast %63 : vector<1x128xf32> to vector<8x128xf32>
      %85 = arith.addf %83, %84 : vector<8x128xf32>
      %c0_46 = arith.constant 0 : index
      %c0_47 = arith.constant 0 : index
      %86 = vector.load %arg19[%c0_46, %c0_47] : memref<8x128xf32, #tpu.memory_space<vmem>>, vector<8x128xf32>
      tpu.vector_store %arg19[%c0_46, %c0_47], %85 {strides = array<i32>} : memref<8x128xf32, #tpu.memory_space<vmem>>, vector<8x128xf32>,
      %cst_48 = arith.constant 0.000000e+00 : f32
      %87 = vector.broadcast %cst_48 : f32 to vector<8x128xf32>
      %c0_49 = arith.constant 0 : index
      %c0_50 = arith.constant 0 : index
      %88 = vector.load %arg20[%c0_49, %c0_50] : memref<8x128xf32, #tpu.memory_space<vmem>>, vector<8x128xf32>
      tpu.vector_store %arg20[%c0_49, %c0_50], %87 {strides = array<i32>} : memref<8x128xf32, #tpu.memory_space<vmem>>, vector<8x128xf32>,
    } else {
    }
    %c0 = arith.constant 0 : index
    %c0_1 = arith.constant 0 : index
    %3 = vector.load %arg19[%c0, %c0_1] : memref<8x128xf32, #tpu.memory_space<vmem>>, vector<8x128xf32>
    %c0_2 = arith.constant 0 : index
    %c0_3 = arith.constant 0 : index
    %4 = vector.load %arg10[%c0_2, %c0_3] : memref<128x512xbf16, #tpu.memory_space<vmem>>, vector<128x512xbf16>
    %5 = arith.extf %4 : vector<128x512xbf16> to vector<128x512xf32>
    %cst = arith.constant dense<0.000000e+00> : vector<8x512xf32>
    %6 = tpu.matmul %3, %5, %cst {dimension_numbers = #tpu.dot_dimension_numbers<[1], [0], [0], [1], [0, 0, 1, 1], [], []>} : vector<8x128xf32>, vector<128x512xf32>, vector<8x512xf32> -> vector<8x512xf32>
    %c0_4 = arith.constant 0 : index
    %c0_5 = arith.constant 0 : index
    %7 = vector.load %arg11[%c0_4, %c0_5] : memref<1x512xf32, #tpu.memory_space<vmem>>, vector<1x512xf32>
    %8 = vector.broadcast %7 : vector<1x512xf32> to vector<8x512xf32>
    %9 = arith.addf %6, %8 : vector<8x512xf32>
    %cst_6 = arith.constant 0.000000e+00 : f32
    %10 = vector.broadcast %cst_6 : f32 to vector<8x512xf32>
    %11 = arith.maximumf %9, %10 : vector<8x512xf32>
    %c0_7 = arith.constant 0 : index
    %c0_8 = arith.constant 0 : index
    %12 = vector.load %arg20[%c0_7, %c0_8] : memref<8x128xf32, #tpu.memory_space<vmem>>, vector<8x128xf32>
    %c0_9 = arith.constant 0 : index
    %c0_10 = arith.constant 0 : index
    %13 = vector.load %arg12[%c0_9, %c0_10] : memref<512x128xbf16, #tpu.memory_space<vmem>>, vector<512x128xbf16>
    %14 = arith.extf %13 : vector<512x128xbf16> to vector<512x128xf32>
    %cst_11 = arith.constant dense<0.000000e+00> : vector<8x128xf32>
    %15 = tpu.matmul %11, %14, %cst_11 {dimension_numbers = #tpu.dot_dimension_numbers<[1], [0], [0], [1], [0, 0, 1, 1], [], []>} : vector<8x512xf32>, vector<512x128xf32>, vector<8x128xf32> -> vector<8x128xf32>
    %16 = arith.addf %12, %15 : vector<8x128xf32>
    %c0_12 = arith.constant 0 : index
    %c0_13 = arith.constant 0 : index
    %17 = vector.load %arg20[%c0_12, %c0_13] : memref<8x128xf32, #tpu.memory_space<vmem>>, vector<8x128xf32>
    tpu.vector_store %arg20[%c0_12, %c0_13], %16 {strides = array<i32>} : memref<8x128xf32, #tpu.memory_space<vmem>>, vector<8x128xf32>,
    %c3_i32 = arith.constant 3 : i32
    %18 = arith.cmpi eq, %arg0, %c3_i32 : i32
    %19 = arith.extui %18 : i1 to i32
    %c0_i32_14 = arith.constant 0 : i32
    %20 = arith.cmpi ne, %19, %c0_i32_14 : i32
    scf.if %20 {
      %c0_15 = arith.constant 0 : index
      %c0_16 = arith.constant 0 : index
      %21 = vector.load %arg20[%c0_15, %c0_16] : memref<8x128xf32, #tpu.memory_space<vmem>>, vector<8x128xf32>
      %22 = arith.addf %3, %21 : vector<8x128xf32>
      %c0_17 = arith.constant 0 : index
      %c0_18 = arith.constant 0 : index
      %23 = vector.load %arg13[%c0_17, %c0_18] : memref<1x128xf32, #tpu.memory_space<vmem>>, vector<1x128xf32>
      %24 = vector.broadcast %23 : vector<1x128xf32> to vector<8x128xf32>
      %25 = arith.addf %22, %24 : vector<8x128xf32>
      %c0_19 = arith.constant 0 : index
      %c0_20 = arith.constant 0 : index
      %26 = vector.load %arg14[%c0_19, %c0_20] : memref<1x128xf32, #tpu.memory_space<vmem>>, vector<1x128xf32>
      %c0_21 = arith.constant 0 : index
      %c0_22 = arith.constant 0 : index
      %27 = vector.load %arg15[%c0_21, %c0_22] : memref<1x128xf32, #tpu.memory_space<vmem>>, vector<1x128xf32>
      %cst_23 = arith.constant dense<0.000000e+00> : vector<8xf32>
      %28 = vector.multi_reduction <add>, %25, %cst_23 [1] : vector<8x128xf32> to vector<8xf32>
      %29 = vector.shape_cast %28 : vector<8xf32> to vector<8x1xf32>
      %cst_24 = arith.constant 1.280000e+02 : f32
      %30 = vector.broadcast %cst_24 : f32 to vector<8x1xf32>
      %31 = arith.divf %29, %30 : vector<8x1xf32>
      %32 = vector.broadcast %31 : vector<8x1xf32> to vector<8x128xf32>
      %33 = arith.subf %25, %32 : vector<8x128xf32>
      %34 = arith.mulf %33, %33 : vector<8x128xf32>
      %cst_25 = arith.constant dense<0.000000e+00> : vector<8xf32>
      %35 = vector.multi_reduction <add>, %34, %cst_25 [1] : vector<8x128xf32> to vector<8xf32>
      %36 = vector.shape_cast %35 : vector<8xf32> to vector<8x1xf32>
      %cst_26 = arith.constant 1.280000e+02 : f32
      %37 = vector.broadcast %cst_26 : f32 to vector<8x1xf32>
      %38 = arith.divf %36, %37 : vector<8x1xf32>
      %39 = vector.broadcast %31 : vector<8x1xf32> to vector<8x128xf32>
      %40 = arith.subf %25, %39 : vector<8x128xf32>
      %cst_27 = arith.constant 9.99999974E-6 : f32
      %41 = vector.broadcast %cst_27 : f32 to vector<8x1xf32>
      %42 = arith.addf %38, %41 : vector<8x1xf32>
      %43 = math.rsqrt %42 : vector<8x1xf32>
      %44 = vector.broadcast %43 : vector<8x1xf32> to vector<8x128xf32>
      %45 = arith.mulf %40, %44 : vector<8x128xf32>
      %46 = vector.broadcast %26 : vector<1x128xf32> to vector<8x128xf32>
      %47 = arith.mulf %45, %46 : vector<8x128xf32>
      %48 = vector.broadcast %27 : vector<1x128xf32> to vector<8x128xf32>
      %49 = arith.addf %47, %48 : vector<8x128xf32>
      %c0_28 = arith.constant 0 : index
      %c0_29 = arith.constant 0 : index
      %50 = vector.load %arg16[%c0_28, %c0_29] : memref<128x128xf32, #tpu.memory_space<vmem>>, vector<128x128xf32>
      %cst_30 = arith.constant dense<0.000000e+00> : vector<8x128xf32>
      %51 = tpu.matmul %49, %50, %cst_30 {dimension_numbers = #tpu.dot_dimension_numbers<[1], [0], [0], [1], [0, 0, 1, 1], [], []>} : vector<8x128xf32>, vector<128x128xf32>, vector<8x128xf32> -> vector<8x128xf32>
      %c0_31 = arith.constant 0 : index
      %c0_32 = arith.constant 0 : index
      %52 = vector.load %arg17[%c0_31, %c0_32] : memref<1x128xf32, #tpu.memory_space<vmem>>, vector<1x128xf32>
      %53 = vector.broadcast %52 : vector<1x128xf32> to vector<8x128xf32>
      %54 = arith.addf %51, %53 : vector<8x128xf32>
      %c0_33 = arith.constant 0 : index
      %c0_34 = arith.constant 0 : index
      %55 = vector.load %arg18[%c0_33, %c0_34] : memref<8x128xf32, #tpu.memory_space<vmem>>, vector<8x128xf32>
      tpu.vector_store %arg18[%c0_33, %c0_34], %54 {strides = array<i32>} : memref<8x128xf32, #tpu.memory_space<vmem>>, vector<8x128xf32>,
    } else {
    }
    return
  }
  func.func @transform_0(%arg0: i32) -> (i32, i32) {
    %c0_i32 = arith.constant 0 : i32
    %c0_i32_0 = arith.constant 0 : i32
    %c0_i32_1 = arith.constant 0 : i32
    return %c0_i32, %c0_i32_0 : i32, i32
  }
  func.func @transform_1(%arg0: i32) -> (i32, i32) {
    %c0_i32 = arith.constant 0 : i32
    %c0_i32_0 = arith.constant 0 : i32
    %c0_i32_1 = arith.constant 0 : i32
    return %c0_i32, %c0_i32_0 : i32, i32
  }
  func.func @transform_2(%arg0: i32) -> (i32, i32) {
    %c0_i32 = arith.constant 0 : i32
    %c0_i32_0 = arith.constant 0 : i32
    %c0_i32_1 = arith.constant 0 : i32
    return %c0_i32, %c0_i32_0 : i32, i32
  }
  func.func @transform_3(%arg0: i32) -> (i32, i32) {
    %c0_i32 = arith.constant 0 : i32
    %c0_i32_0 = arith.constant 0 : i32
    %c0_i32_1 = arith.constant 0 : i32
    return %c0_i32, %c0_i32_0 : i32, i32
  }
  func.func @transform_4(%arg0: i32) -> (i32, i32) {
    %c0_i32 = arith.constant 0 : i32
    %c0_i32_0 = arith.constant 0 : i32
    %c0_i32_1 = arith.constant 0 : i32
    return %c0_i32, %c0_i32_0 : i32, i32
  }
  func.func @transform_5(%arg0: i32) -> (i32, i32) {
    %c0_i32 = arith.constant 0 : i32
    %c0_i32_0 = arith.constant 0 : i32
    %c0_i32_1 = arith.constant 0 : i32
    return %c0_i32, %c0_i32_0 : i32, i32
  }
  func.func @transform_6(%arg0: i32) -> (i32, i32) {
    %c0_i32 = arith.constant 0 : i32
    %c0_i32_0 = arith.constant 0 : i32
    %c0_i32_1 = arith.constant 0 : i32
    return %c0_i32, %c0_i32_0 : i32, i32
  }
  func.func @transform_7(%arg0: i32) -> (i32, i32) {
    %c0_i32 = arith.constant 0 : i32
    %c0_i32_0 = arith.constant 0 : i32
    %c0_i32_1 = arith.constant 0 : i32
    return %c0_i32, %c0_i32_0 : i32, i32
  }
  func.func @transform_8(%arg0: i32) -> (i32, i32) {
    %c0_i32 = arith.constant 0 : i32
    %c0_i32_0 = arith.constant 0 : i32
    %c0_i32_1 = arith.constant 0 : i32
    return %c0_i32, %c0_i32_0 : i32, i32
  }
  func.func @transform_9(%arg0: i32) -> (i32, i32) {
    %c0_i32 = arith.constant 0 : i32
    %c0_i32_0 = arith.constant 0 : i32
    return %c0_i32, %arg0 : i32, i32
  }
  func.func @transform_10(%arg0: i32) -> (i32, i32) {
    %c0_i32 = arith.constant 0 : i32
    %c0_i32_0 = arith.constant 0 : i32
    return %c0_i32, %arg0 : i32, i32
  }
  func.func @transform_11(%arg0: i32) -> (i32, i32) {
    %c0_i32 = arith.constant 0 : i32
    %c0_i32_0 = arith.constant 0 : i32
    return %arg0, %c0_i32 : i32, i32
  }
  func.func @transform_12(%arg0: i32) -> (i32, i32) {
    %c0_i32 = arith.constant 0 : i32
    %c0_i32_0 = arith.constant 0 : i32
    %c0_i32_1 = arith.constant 0 : i32
    return %c0_i32, %c0_i32_0 : i32, i32
  }
  func.func @transform_13(%arg0: i32) -> (i32, i32) {
    %c0_i32 = arith.constant 0 : i32
    %c0_i32_0 = arith.constant 0 : i32
    %c0_i32_1 = arith.constant 0 : i32
    return %c0_i32, %c0_i32_0 : i32, i32
  }
  func.func @transform_14(%arg0: i32) -> (i32, i32) {
    %c0_i32 = arith.constant 0 : i32
    %c0_i32_0 = arith.constant 0 : i32
    %c0_i32_1 = arith.constant 0 : i32
    return %c0_i32, %c0_i32_0 : i32, i32
  }
  func.func @transform_15(%arg0: i32) -> (i32, i32) {
    %c0_i32 = arith.constant 0 : i32
    %c0_i32_0 = arith.constant 0 : i32
    %c0_i32_1 = arith.constant 0 : i32
    return %c0_i32, %c0_i32_0 : i32, i32
  }
  func.func @transform_16(%arg0: i32) -> (i32, i32) {
    %c0_i32 = arith.constant 0 : i32
    %c0_i32_0 = arith.constant 0 : i32
    %c0_i32_1 = arith.constant 0 : i32
    return %c0_i32, %c0_i32_0 : i32, i32
  }
  func.func @transform_17(%arg0: i32) -> (i32, i32) {
    %c0_i32 = arith.constant 0 : i32
    %c0_i32_0 = arith.constant 0 : i32
    %c0_i32_1 = arith.constant 0 : i32
    return %c0_i32, %c0_i32_0 : i32, i32
  }
}

</mosaic_0001>

<bundles_post_ra>
// kernel: tpu_custom_call.1
= control target key start
LH: loop header
LB: loop body
LE: loop exit
PB: predicated region body
PF: predicated region fallthrough
CT: control target
= control target key end

     0   :  { %s4971_s0 = inlined_call_operand.hbm [shape: f32[8,32], index: 0, kind: input, shape index: {}]   ;;  %s4972_s1 = inlined_call_operand.hbm [shape: f32[32,128], index: 1, kind: input, shape index: {}]   ;;  %s4973_s2 = inlined_call_operand.hbm [shape: f32[1,128], index: 2, kind: input, shape index: {}]   ;;  %s4974_s3 = inlined_call_operand.hbm [shape: f32[128,384], index: 3, kind: input, shape index: {}]   ;;  %s4975_s4 = inlined_call_operand.vmem [shape: f32[1,384], index: 4, kind: input, shape index: {}]   ;;  %s4976_s5 = inlined_call_operand.hbm [shape: f32[128,128], index: 5, kind: input, shape index: {}]   ;;  %s4977_s6 = inlined_call_operand.vmem [shape: f32[1,128], index: 6, kind: input, shape index: {}]   ;;  %s4978_s7 = inlined_call_operand.vmem [shape: f32[1,128], index: 7, kind: input, shape index: {}]   ;;  %s4979_s8 = inlined_call_operand.vmem [shape: f32[1,128], index: 8, kind: input, shape index: {}]   ;;  %s4980_s9 = inlined_call_operand.hbm [shape: bf16[128,2048], index: 9, kind: input, shape index: {}]   ;;  %s4981_s10 = inlined_call_operand.hbm [shape: f32[1,2048], index: 10, kind: input, shape index: {}]   ;;  %s4982_s11 = inlined_call_operand.hbm [shape: bf16[2048,128], index: 11, kind: input, shape index: {}]   ;;  %s4983_s12 = inlined_call_operand.vmem [shape: f32[1,128], index: 12, kind: input, shape index: {}]   ;;  %s4984_s13 = inlined_call_operand.vmem [shape: f32[1,128], index: 13, kind: input, shape index: {}]   ;;  %s4985_s14 = inlined_call_operand.vmem [shape: f32[1,128], index: 14, kind: input, shape index: {}]   ;;  %s4986_s15 = inlined_call_operand.hbm [shape: f32[128,128], index: 15, kind: input, shape index: {}]   ;;  %s4987_s16 = inlined_call_operand.vmem [shape: f32[1,128], index: 16, kind: input, shape index: {}]   ;;  %s4988_s17 = inlined_call_operand.hbm [shape: f32[8,128], index: 17, kind: output, shape index: {}]  }
   0x1   :  { %4994 = sst [smem:[#allocation29_spill]] %s4971_s0 }
   0x2   :  { %4995 = sst [smem:[#allocation30_spill]] %s4972_s1 }
   0x3   :  { %4996 = sst [smem:[#allocation31_spill]] %s4974_s3 }
   0x4   :  { %4997 = sst [smem:[#allocation32_spill]] %s4978_s7 }
   0x5   :  { %4998 = sst [smem:[#allocation33_spill]] %s4979_s8 }
   0x6   :  { %4999 = sst [smem:[#allocation34_spill]] %s4980_s9 }
   0x7   :  { %5000 = sst [smem:[#allocation35_spill]] %s4983_s12 }
   0x8   :  { %5001 = sst [smem:[#allocation36_spill]] %s4984_s13 }
   0x9   :  { %5002 = sst [smem:[#allocation37_spill]] %s4985_s14 }
   0xa   :  { %5003 = sst [smem:[#allocation38_spill]] %s4986_s15 }
   0xb   :  { %5004 = sst [smem:[#allocation39_spill]] %s4987_s16 }
   0xc   :  { %5005 = sst [smem:[#allocation40_spill]] %s4988_s17 }
   0xd   :  { %22 = vsyncpa [#allocation5], 0 }
   0xe   :  { %23 = vsyncpa [#allocation8], 0 }
   0xf   :  { %24 = vsyncpa [#allocation11], 0 }
  0x10   :  { %25 = vsyncpa [#allocation14], 0 }
  0x11   :  { %27 = vsyncpa [#allocation14 + $0x1], 0 }
  0x12   :  { %28 = vsyncpa [#allocation17], 0 }
  0x13   :  { %30 = vsyncpa [#allocation17 + $0x1], 0 }
  0x14   :  { %31 = vsyncpa [#allocation6], 0  ;;  %s4089_s24 = smov 0   ;;  %s4091_s25 = smov 0  }
  0x15   :  { %s4093_s26 = smov 0   ;;  %s4095_s27 = smov 0  }
  0x16 LB: > { %s5006_s0 = sld [smem:[#allocation30_spill]]  ;;  %s4113_s18 = sadd.s32 4294967295, %s3969_s27   ;;  %s3969_s27 = sphi %s4095_s27, %s5034_s27   ;;  %s3965_s26 = sphi %s4093_s26, %s5038_s26   ;;  %s3961_s25 = sphi %s4091_s25, %s5037_s25   ;;  %s3957_s24 = sphi %s4089_s24, %s5036_s24  }
  0x17   : > { %p3209_p0 = scmp.ge.s32.totalorder %s3969_s27, 1  ;;  %p247_p1 = scmp.eq.s32.totalorder %s4113_s18, 0 }
  0x18   : > { %p435_p2 = scmp.lt.s32.totalorder %s3969_s27, 5  ;;  %p3210_p3 = scmp.ne.s32.totalorder %s4113_s18, 0 }
  0x19   : > { %s3971_s1 = smov [#allocation7]   ;;  %s5008_s3 = sld [smem:[#allocation31_spill]] }
  0x1a   : > { %p4119_p4 = pnand %p3209_p0, %p435_p2  ;;  %s460_s20 = sshll.u32 %s3971_s1, 4  ;;  %s461_s20 = int_to_ptr.vmem [resolvable:$true] %s460_s20 }
  0x1b   : > { %s3972_s29 = smov [#allocation10]   ;;  %s4989_s1 = smov 128  }
  0x1c   : > { %s458_s30 = sshll.u32 %s5006_s0, 4  ;;  %p3461_p5 = pneg %p4119_p4  ;;  %s459_s30 = int_to_ptr.hbm [resolvable:$true] %s458_s30 }
  0x1d   : > { %s486_s0 = sshll.u32 %s3972_s29, 4  ;;  %s4990_s17 = smov 8   ;;  %s487_s0 = int_to_ptr.vmem [resolvable:$true] %s486_s0 }
  0x1e   : > { %p4130_p6 = pnand %p3461_p5, %p247_p1  ;;  %s3975_s21 = smov 384  }
  0x1f   : > { %s484_s23 = sshll.u32 %s5008_s3, 4  ;;  %s3976_s22 = smov 24   ;;  %s485_s23 = int_to_ptr.hbm [resolvable:$true] %s484_s23 }
  0x20   : > { %3467 = dma.hbm_to_vmem [thread:$0]  (!%p4130_p6), %s459_s30, 512, %s461_s20, [#allocation8], %s4989_s1, %s4989_s1, %s4990_s17  }
  0x21   : > { %3473 = dma.hbm_to_vmem [thread:$0]  (!%p4130_p6), %s485_s23, 6144, %s487_s0, [#allocation11], %s3975_s21, %s3975_s21, %s3976_s22  }
  0x22   : > { %s5010_s15 = sld [smem:[#allocation38_spill]]  ;;  %s3977_s14 = smov [#allocation18]  }
  0x23   : > { %s535_s30 = sshll.u32 %s3977_s14, 4  ;;  %s4150_s20 = sadd.s32 1, %s3969_s27   ;;  %s536_s30 = int_to_ptr.vmem [resolvable:$true] %s535_s30 }
  0x24   : > { %5011 = sst [smem:[#allocation27_spill]] %s4150_s20  ;;  %s230_s3 = ssub.s32 %s3969_s27, %s4150_s20 }
  0x25   : > { %s233_s23 = sadd.s32 1, %s3965_s26  ;;  %p231_p7 = scmp.eq.s32.totalorder %s230_s3, 0 }
  0x26   : > { %p240_p8 = scmp.ne.s32.totalorder %s3965_s26, %s3961_s25  ;;  %p241_p9 = scmp.eq.s32.totalorder %s3969_s27, 0 }
  0x27   : > { %p246_p10 = scmp.ne.s32.totalorder %s3961_s25, %s3957_s24  ;;  %p3496_p13 = scmp.lt.s32.totalorder %s3969_s27, 4 }
  0x28   : > { %s533_s16 = sshll.u32 %s5010_s15, 4  ;;  %p4163_p11 = por %p241_p9, %p240_p8  ;;  %s534_s16 = int_to_ptr.hbm [resolvable:$true] %s533_s16 }
  0x29   : > { %3479 = dma.hbm_to_vmem [thread:$0]  (!%p4130_p6), %s534_s16, 2048, %s536_s30, [#allocation17], %s4989_s1, %s4989_s1, %s4990_s17  }
  0x2a   : > { %s4161_s0 = scalar_select %p231_p7, %s3965_s26, %s233_s23  }
  0x2b   : > { %p4169_p12 = por %p247_p1, %p246_p10  ;;  %s4993_s22 = sand.u32 1, %s3965_s26  }
  0x2c   : > { %5012 = sst [smem:[#allocation28_spill]] %s4161_s0  ;;  %s4178_s29 = sshll.u32 %s4993_s22, 8 }
  0x2d   : > { %s3266_s24 = sshll.u32 %s3969_s27, 4  ;;  %s5015_s9 = sld [smem:[#allocation34_spill]] }
  0x2e   : > { %s556_s17 = scalar_lea.vmem [#allocation13], %s4178_s29  ;;  %p4187_p0 = pnand %p3496_p13, %p4163_p11 }
  0x2f   : > { %s564_s15 = sshll.u32 %s556_s17, 4  ;;  %s5017_s22 = sld [smem:[#allocation29_spill]]  ;;  %s565_s15 = int_to_ptr.vmem [resolvable:$true] %s564_s15 }
  0x30   : > { %s5018_s12 = sand.u32 1, %s3969_s27   ;;  %p3707_p5 = pneg %p4187_p0 }
  0x31   : > { %s4196_s8 = scalar_lea.sflag [#allocation14], %s5018_s12 }
  0x33   : > { %s561_s23 = scalar_lea.hbm %s5015_s9, %s3266_s24  ;;  %s3710_s20 = scalar_lea.hbm %s5015_s9, 1024 }
  0x34   : > { %s562_s1 = sshll.u32 %s561_s23, 4  ;;  %s563_s1 = int_to_ptr.hbm [resolvable:$true] %s562_s1 }
  0x35   : > { %s447_s13 = sshll.u32 %s5017_s22, 4  ;;  %s3703_s24 = sshra.s32 %s563_s1, 4  ;;  %s3704_s24 = int_to_ptr.hbm [resolvable:$true] %s3703_s24  ;;  %s448_s13 = int_to_ptr.hbm [resolvable:$true] %s447_s13 }
  0x36   : > { %s3705_s30 = scalar_lea.hbm %s3704_s24, 256  ;;  %p3711_p9 = scmp.lt.s32.totalorder %s3704_s24, %s5015_s9 }
  0x37   : > { %p3706_p2 = scmp.ne.s32.totalorder %s3704_s24, %s3705_s30  ;;  %p3712_p10 = scmp.lt.s32.totalorder %s3710_s20, %s3705_s30 }
  0x39   : > { %p3708_p7 = pnand %p3707_p5, %p3706_p2  ;;  %p3713_p11 = por %p3712_p10, %p3711_p9 }
  0x3b   : > { %p3709_p8 = pneg %p3708_p7 }
  0x3d   : > { %p3714_p13 = pnand %p3713_p11, %p3709_p8 }
  0x3f   : > { %3717 = shalt.err (!%p3714_p13)
}
  0x40   : > { %s3978_s12 = smov 1024   ;;  %s3979_s22 = smov 256  }
  0x41   : > { %s3980_s23 = smov 16   ;;  %s3981_s17 = smov [#allocation4]  }
  0x42   : > { %3483 = dma.hbm_to_vmem [thread:$0]  (!%p4187_p0), %s563_s1, 4096, %s565_s15, %s4196_s8, %s3978_s12, %s3979_s22, %s3980_s23  }
  0x43   : > { %s449_s14 = sshll.u32 %s3981_s17, 4  ;;  %s473_s30 = sshll.u32 %s4973_s2, 4  ;;  %s450_s14 = int_to_ptr.vmem [resolvable:$true] %s449_s14  ;;  %s474_s30 = int_to_ptr.hbm [resolvable:$true] %s473_s30 }
  0x44   : > { %3464 = dma.hbm_to_vmem [thread:$0]  (!%p4130_p6), %s448_s13, 128, %s450_s14, [#allocation5]  }
  0x45   : > { %s501_s9 = sshll.u32 %s4976_s5, 4  ;;  %s3982_s7 = smov [#allocation9]   ;;  %s502_s9 = int_to_ptr.hbm [resolvable:$true] %s501_s9 }
  0x46   : > { %s475_s15 = sshll.u32 %s3982_s7, 4  ;;  %s3983_s1 = smov [#allocation12]   ;;  %s476_s15 = int_to_ptr.vmem [resolvable:$true] %s475_s15 }
  0x47   : > { %3470 = dma.hbm_to_vmem [thread:$0]  (!%p4130_p6), %s474_s30, 16, %s476_s15, [#allocation8]  }
  0x48   : > { %s503_s12 = sshll.u32 %s3983_s1, 4  ;;  %s5019_s22 = sand.u32 1, %s3965_s26   ;;  %s504_s12 = int_to_ptr.vmem [resolvable:$true] %s503_s12 }
  0x49   : > { %s3220_s23 = sshll.u32 %s5019_s22, 2  ;;  %s5020_s17 = smov 8  }
  0x4a   : > { %s5021_s21 = smov 128   ;;  %s3221_s13 = sshll.u32 %s3969_s27, 2 }
  0x4b   : > { %3476 = dma.hbm_to_vmem [thread:$0]  (!%p4130_p6), %s502_s9, 2048, %s504_s12, [#allocation11], %s5021_s21, %s5021_s21, %s5020_s17  }
  0x4c   : > { %s578_s14 = scalar_lea.vmem [#allocation15], %s3220_s23  ;;  %s582_s3 = scalar_lea.hbm %s4981_s10, %s3221_s13 }
  0x4d   : > { %s586_s24 = sshll.u32 %s578_s14, 4  ;;  %s584_s30 = sshll.u32 %s582_s3, 4  ;;  %s587_s24 = int_to_ptr.vmem [resolvable:$true] %s586_s24  ;;  %s585_s30 = int_to_ptr.hbm [resolvable:$true] %s584_s30 }
  0x4e   : > { %s3823_s15 = sshra.s32 %s585_s30, 4  ;;  %s3830_s12 = scalar_lea.hbm %s4981_s10, 16  ;;  %s3824_s15 = int_to_ptr.hbm [resolvable:$true] %s3823_s15 }
  0x4f   : > { %s3825_s1 = scalar_lea.hbm %s3824_s15, 4  ;;  %p3831_p6 = scmp.lt.s32.totalorder %s3824_s15, %s4981_s10 }
  0x50   : > { %p3826_p2 = scmp.ne.s32.totalorder %s3824_s15, %s3825_s1  ;;  %p3832_p9 = scmp.lt.s32.totalorder %s3830_s12, %s3825_s1 }
  0x52   : > { %p3828_p7 = pnand %p3826_p2, %p3707_p5  ;;  %p3833_p10 = por %p3832_p9, %p3831_p6 }
  0x54   : > { %p3829_p8 = pneg %p3828_p7 }
  0x56   : > { %p3834_p11 = pnand %p3833_p10, %p3829_p8 }
  0x58   : > { %3837 = shalt.err (!%p3834_p11)
}
  0x59   : > { %3486 = dma.hbm_to_vmem [thread:$0]  (!%p4187_p0), %s585_s30, 64, %s587_s24, %s4196_s8  }
  0x5a   : > { %s3267_s17 = sshll.u32 %s3969_s27, 8  ;;  %s597_s21 = scalar_lea.vmem [#allocation16], %s4178_s29 }
  0x5b   : > { %s605_s13 = sshll.u32 %s597_s21, 4  ;;  %s602_s7 = scalar_lea.hbm %s4982_s11, %s3267_s17  ;;  %s606_s13 = int_to_ptr.vmem [resolvable:$true] %s605_s13 }
  0x5c   : > { %s603_s3 = sshll.u32 %s602_s7, 4  ;;  %s5022_s15 = sand.u32 1, %s3969_s27   ;;  %s604_s3 = int_to_ptr.hbm [resolvable:$true] %s603_s3 }
  0x5d   : > { %s594_s1 = scalar_lea.sflag [#allocation17], %s5022_s15  ;;  %s3853_s28 = sshra.s32 %s604_s3, 4  ;;  %s3854_s28 = int_to_ptr.hbm [resolvable:$true] %s3853_s28 }
  0x5e   : > { %s3855_s9 = scalar_lea.hbm %s3854_s28, 256  ;;  %s3860_s24 = scalar_lea.hbm %s4982_s11, 1024 }
  0x5f   : > { %p3856_p13 = scmp.ne.s32.totalorder %s3854_s28, %s3855_s9  ;;  %p3861_p8 = scmp.lt.s32.totalorder %s3854_s28, %s4982_s11 }
  0x60   : > { %p3862_p6 = scmp.lt.s32.totalorder %s3860_s24, %s3855_s9 }
  0x61   : > { %p3858_p2 = pnand %p3856_p13, %p3707_p5 }
  0x62   : > { %p3863_p9 = por %p3862_p6, %p3861_p8 }
  0x63   : > { %p3859_p7 = pneg %p3858_p2 }
  0x65   : > { %p3864_p10 = pnand %p3863_p9, %p3859_p7 }
  0x67   : > { %3867 = shalt.err (!%p3864_p10)
}
  0x68   : > { %s3984_s27 = smov 64   ;;  %s3985_s22 = smov 4  }
  0x69   : > { %3489 = dma.hbm_to_vmem [thread:$0]  (!%p4187_p0), %s604_s3, 4096, %s606_s13, %s594_s1, %s3984_s27, %s3984_s27, %s3985_s22  }
  0x6a   : > { %617 = sbr.rel (%p4119_p4) target bundleno = 2407 (0x967), region = 88 }
  0x6f   : > { %3928 = dma.done.wait (%p247_p1), [#allocation5], 128  }
  0x70   : > { %3930 = vsyncadd (%p247_p1), [#allocation5], 4294967168 }
  0x71   : > { %3932 = dma.done.wait (%p247_p1), [#allocation8], 528  }
  0x72   : > { %3934 = vsyncadd (%p247_p1), [#allocation8], 4294966768 }
  0x73   : > { %3936 = dma.done.wait (%p247_p1), [#allocation11], 8192  }
  0x74   : > { %3938 = vsyncadd (%p247_p1), [#allocation11], 4294959104  ;;  %s644_s19 = sand.u32 1, %s4113_s18   ;;  %s646_s0 = sand.u32 1, %s3961_s25  }
  0x75   : > { %s3231_s23 = sshll.u32 %s646_s0, 8  ;;  %s645_s17 = scalar_lea.sflag [#allocation14], %s644_s19 }
  0x76   : > { %s4279_s21 = scalar_lea.vmem [#allocation13], %s3231_s23 }
  0x77   : > { %3940 = dma.done.wait (%p4169_p12), %s645_s17, 4160  }
  0x78   : > { %3942 = vsyncadd (%p4169_p12), %s645_s17, 4294963136  ;;  %s4285_s13 = sshll.u32 %s646_s0, 2  ;;  %s665_s20 = scalar_lea.sflag [#allocation17], %s644_s19 }
  0x79   : > { %s658_s14 = scalar_lea.vmem [#allocation15], %s4285_s13  ;;  %s4288_s7 = scalar_lea.vmem [#allocation16], %s3231_s23 }
  0x7a   : > { %3944 = dma.done.wait (%p4169_p12), %s665_s20, 4096  }
  0x7b   : > { %3946 = vsyncadd (%p4169_p12), %s665_s20, 4294963200 }
  0x7c   : > { %3948 = dma.done.wait (%p247_p1), [#allocation17], 2048  }
  0x7d   : > { %3950 = vsyncadd (%p247_p1), [#allocation17], 4294965248  ;;  %736 = sbr.rel (%p3210_p3) target bundleno = 1681 (0x691), region = 128  ;;  %s3986_s15 = smov (!%p3210_p3), 64  }
  0x7e   : > { %s3987_s1 = smov (!%p3210_p3), 96   ;;  %s3988_s28 = smov (!%p3210_p3), 112  }
  0x7f   : > { %s3989_s9 = smov (!%p3210_p3), 48   ;;  %s3990_s8 = smov (!%p3210_p3), 80  }
  0x80   : > { %s3991_s29 = smov (!%p3210_p3), 32   ;;  %s3992_s24 = smov (!%p3210_p3), 16  }
  0x81   : > { %s5027_s19 = sld [smem:[#allocation32_spill]] (!%p3210_p3) }
  0x82   : > { %v741_v0 = vld [vmem:[#allocation7 + $0x18] sm:$0xff]  ;;  %v740_v1 = vld [vmem:[#allocation7 + $0x10] sm:$0xff]  ;;  %v739_v2 = vld [vmem:[#allocation7 + $0x8] sm:$0xff]  ;;  %vm746_vm0 = vcmask 261120   ;;  %vm910_vm1 = vcmask 1047556   ;;  %vm1626_vm2 = vcmask 130048  }
  0x83   : > { %762 = vmatpush.msra.mxu0 %v741_v0  ;;  %v815_v3 = vld [vmem:[#allocation10 + $0x168] sm:$0xff]  ;;  %v816_v4 = vld [vmem:[#allocation10 + $0x170] sm:$0xff]  ;;  %v817_v5 = vld [vmem:[#allocation10 + $0x178] sm:$0xff]  ;;  %vm1835_vm3 = vcmask 64512   ;;  %s5028_s17 = sld [smem:[#allocation33_spill]] }
  0x84   : > { %826 = vmatpush.msra.mxu1 %v815_v3  ;;  %v812_v6 = vld [vmem:[#allocation10 + $0x150] sm:$0xff]  ;;  %846 = vmatpush.msra.mxu2 %v816_v4  ;;  %v813_v7 = vld [vmem:[#allocation10 + $0x158] sm:$0xff]  ;;  %v814_v8 = vld [vmem:[#allocation10 + $0x160] sm:$0xff] }
  0x85   : > { %763 = vmatpush.msra.mxu0 %v740_v1  ;;  %v809_v9 = vld [vmem:[#allocation10 + $0x138] sm:$0xff]  ;;  %866 = vmatpush.msra.mxu3 %v817_v5  ;;  %v810_v11 = vld [vmem:[#allocation10 + $0x140] sm:$0xff]  ;;  %v811_v13 = vld [vmem:[#allocation10 + $0x148] sm:$0xff] }
  0x86   : > { %v738_v10 = vld [vmem:[#allocation7] sm:$0xff]  ;;  %827 = vmatpush.msra.mxu1 %v812_v6  ;;  %v737_v12 = vld [vmem:[#allocation4] sm:$0xff]  ;;  %847 = vmatpush.msra.mxu2 %v813_v7  ;;  %v807_v15 = vld [vmem:[#allocation10 + $0x128] sm:$0xff] }
  0x87   : > { %764 = vmatpush.msra.mxu0 %v739_v2  ;;  %867 = vmatpush.msra.mxu3 %v814_v8  ;;  %v806_v14 = vld [vmem:[#allocation10 + $0x120] sm:$0xff]  ;;  %v808_v16 = vld [vmem:[#allocation10 + $0x130] sm:$0xff]  ;;  %v803_v17 = vld [vmem:[#allocation10 + $0x108] sm:$0xff] }
  0x88   : > { %828 = vmatpush.msra.mxu1 %v809_v9  ;;  %848 = vmatpush.msra.mxu2 %v810_v11  ;;  %v804_v18 = vld [vmem:[#allocation10 + $0x110] sm:$0xff]  ;;  %v805_v19 = vld [vmem:[#allocation10 + $0x118] sm:$0xff]  ;;  %v802_v22 = vld [vmem:[#allocation10 + $0x100] sm:$0xff]  ;;  %v3993_v11 = vmov 1983009808  }
  0x89   : > { %765 = vmatpush.msra.mxu0 %v738_v10  ;;  %868 = vmatpush.msra.mxu3 %v811_v13  ;;  %v800_v20 = vld [vmem:[#allocation10 + $0xf0] sm:$0xff]  ;;  %v801_v21 = vld [vmem:[#allocation10 + $0xf8] sm:$0xff]  ;;  %v798_v24 = vld [vmem:[#allocation10 + $0xe0] sm:$0xff] }
  0x8a   : > { %3236 = vmatmul.msk.f32.vlgmr.msra.gmra.mxu0 %vm746_vm0, %v737_v12  ;;  %829 = vmatpush.msra.mxu1 %v806_v14  ;;  %v797_v23 = vld [vmem:[#allocation10 + $0xd8] sm:$0xff]  ;;  %v799_v25 = vld [vmem:[#allocation10 + $0xe8] sm:$0xff]  ;;  %v794_v26 = vld [vmem:[#allocation10 + $0xc0] sm:$0xff]  ;;  %v915_v12 = vunpack.c.l.s4 %v3993_v11 }
  0x8b   : > { %849 = vmatpush.msra.mxu2 %v807_v15  ;;  %869 = vmatpush.msra.mxu3 %v808_v16  ;;  %v795_v27 = vld [vmem:[#allocation10 + $0xc8] sm:$0xff]  ;;  %v796_v28 = vld [vmem:[#allocation10 + $0xd0] sm:$0xff]  ;;  %v793_v31 = vld [vmem:[#allocation10 + $0xb8] sm:$0xff] }
  0x8c   : > { %830 = vmatpush.msra.mxu1 %v803_v17  ;;  %v791_v29 = vld [vmem:[#allocation10 + $0xa8] sm:$0xff]  ;;  %v792_v30 = vld [vmem:[#allocation10 + $0xb0] sm:$0xff]  ;;  %v789_v33 = vld [vmem:[#allocation10 + $0x98] sm:$0xff] }
  0x8d   : > { %850 = vmatpush.msra.mxu2 %v804_v18  ;;  %870 = vmatpush.msra.mxu3 %v805_v19  ;;  %v788_v32 = vld [vmem:[#allocation10 + $0x90] sm:$0xff]  ;;  %v790_v34 = vld [vmem:[#allocation10 + $0xa0] sm:$0xff]  ;;  %v785_v35 = vld [vmem:[#allocation10 + $0x78] sm:$0xff] }
  0x8e   : > { %831 = vmatpush.msra.mxu1 %v800_v20  ;;  %v786_v36 = vld [vmem:[#allocation10 + $0x80] sm:$0xff]  ;;  %v787_v37 = vld [vmem:[#allocation10 + $0x88] sm:$0xff]  ;;  %v784_v40 = vld [vmem:[#allocation10 + $0x70] sm:$0xff] }
  0x8f   : > { %851 = vmatpush.msra.mxu2 %v801_v21  ;;  %871 = vmatpush.msra.mxu3 %v802_v22  ;;  %v782_v38 = vld [vmem:[#allocation10 + $0x60] sm:$0xff]  ;;  %v783_v39 = vld [vmem:[#allocation10 + $0x68] sm:$0xff]  ;;  %v780_v42 = vld [vmem:[#allocation10 + $0x50] sm:$0xff]  ;;  %v4336_v21 = vunpack.c.0.s8 %v915_v12 }
  0x90   : > { %832 = vmatpush.msra.mxu1 %v797_v23  ;;  %v779_v41 = vld [vmem:[#allocation10 + $0x48] sm:$0xff]  ;;  %v781_v43 = vld [vmem:[#allocation10 + $0x58] sm:$0xff]  ;;  %v776_v44 = vld [vmem:[#allocation10 + $0x30] sm:$0xff] }
  0x91   : > { %852 = vmatpush.msra.mxu2 %v798_v24  ;;  %872 = vmatpush.msra.mxu3 %v799_v25  ;;  %v777_v45 = vld [vmem:[#allocation10 + $0x38] sm:$0xff]  ;;  %v778_v46 = vld [vmem:[#allocation10 + $0x40] sm:$0xff]  ;;  %v775_v49 = vld [vmem:[#allocation10 + $0x28] sm:$0xff]  ;;  %v3994_v25 = vmov 1934713408  }
  0x92   : > { %833 = vmatpush.msra.mxu1 %v794_v26  ;;  %v773_v47 = vld [vmem:[#allocation10 + $0x18] sm:$0xff]  ;;  %v774_v48 = vld [vmem:[#allocation10 + $0x20] sm:$0xff]  ;;  %v771_v51 = vld [vmem:[#allocation10 + $0x8] sm:$0xff]  ;;  %v963_v26 = vunpack.c.l.s4 %v3994_v25 }
  0x93   : > { %853 = vmatpush.msra.mxu2 %v795_v27  ;;  %873 = vmatpush.msra.mxu3 %v796_v28  ;;  %v770_v50 = vld [vmem:[#allocation10] sm:$0xff]  ;;  %v772_v52 = vld [vmem:[#allocation10 + $0x10] sm:$0xff]  ;;  %v3565_v53 = vld [vmem:[#allocation9] ss:$0 sm:$0xff] }
  0x94   : > { %834 = vmatpush.msra.mxu1 %v791_v29  ;;  %v818_v56 = vld [vmem:[%s4975_s4] sm:$0x7] }
  0x95   : > { %854 = vmatpush.msra.mxu2 %v792_v30  ;;  %874 = vmatpush.msra.mxu3 %v793_v31  ;;  %v820_v57 = vperm.slane %v818_v56, 0  ;;  %v821_v61 = vperm.slane %v818_v56, 1  ;;  %v822_v0 = vperm.slane %v818_v56, 2 }
  0x96   : > { %835 = vmatpush.msra.mxu1 %v788_v32 }
  0x97   : > { %855 = vmatpush.msra.mxu2 %v789_v33  ;;  %875 = vmatpush.msra.mxu3 %v790_v34 }
  0x98   : > { %836 = vmatpush.msra.mxu1 %v785_v35 }
  0x99   : > { %856 = vmatpush.msra.mxu2 %v786_v36  ;;  %876 = vmatpush.msra.mxu3 %v787_v37 }
  0x9a   : > { %837 = vmatpush.msra.mxu1 %v782_v38 }
  0x9b   : > { %857 = vmatpush.msra.mxu2 %v783_v39  ;;  %877 = vmatpush.msra.mxu3 %v784_v40 }
  0x9c   : > { %838 = vmatpush.msra.mxu1 %v779_v41 }
  0x9d   : > { %858 = vmatpush.msra.mxu2 %v780_v42  ;;  %878 = vmatpush.msra.mxu3 %v781_v43 }
  0x9e   : > { %839 = vmatpush.msra.mxu1 %v776_v44 }
  0x9f   : > { %859 = vmatpush.msra.mxu2 %v777_v45  ;;  %879 = vmatpush.msra.mxu3 %v778_v46 }
  0xa0   : > { %840 = vmatpush.msra.mxu1 %v773_v47 }
  0xa1   : > { %860 = vmatpush.msra.mxu2 %v774_v48  ;;  %880 = vmatpush.msra.mxu3 %v775_v49 }
  0xa2   : > { %841 = vmatpush.msra.mxu1 %v770_v50 }
  0xa3   : > { %861 = vmatpush.msra.mxu2 %v771_v51  ;;  %881 = vmatpush.msra.mxu3 %v772_v52 }
 0x107   : > { %v767_v54 = vpop.f32.mrf.mxu0 }
 0x108   : > { %v4301_v55 = vadd.f32 %v3565_v53, %v767_v54 }
 0x10a   : > { %842 = vmatmul.f32.vlgmr.msra.gmra.mxu1 %v4301_v55  ;;  %862 = vmatmul.f32.vlgmr.msra.gmra.mxu2 %v4301_v55 }
 0x10b   : > { %882 = vmatmul.f32.vlgmr.msra.gmra.mxu3 %v4301_v55 }
 0x187   : > { %v843_v58 = vpop.f32.mrf.mxu1 }
 0x188   : > { %v844_v59 = vadd.f32 %v843_v58, %v820_v57  ;;  %v4359_v57 = vunpack.c.0.s8 %v963_v26 }
 0x18a   : > { %v886_v60 = vmul.f32 0.25, %v844_v59 }
 0x18c   : > { %897 = vrot.lane.b32.xlu2 %v886_v60, %s3986_s15  ;;  %891 = vrot.lane.b32.xlu1 %v886_v60, %s3987_s1  ;;  %v912_v16 = vrot.slane %v886_v60, 4 }
 0x18d   : > { %888 = vrot.lane.b32.xlu0 %v886_v60, %s3988_s28  ;;  %v863_v62 = vpop.f32.mrf.mxu2 }
 0x18e   : > { %v864_v63 = vadd.f32 %v863_v62, %v821_v61  ;;  %v883_v1 = vpop.f32.mrf.mxu3 }
 0x18f   : > { %v4321_v2 = vadd.f32 %v883_v1, %v822_v0 }
 0x190   : > { %v1158_v18 = vrot.slane %v864_v63, 4 }
 0x194   : > { %1147 = vrot.lane.b32.xlu2 %v864_v63, %s3989_s9  ;;  %894 = vrot.lane.b32.xlu1 %v886_v60, %s3990_s8 }
 0x195   : > { %1135 = vrot.lane.b32.xlu0 %v864_v63, %s3988_s28 }
 0x19c   : > { %1150 = vrot.lane.b32.xlu2 %v864_v63, %s3991_s29  ;;  %1144 = vrot.lane.b32.xlu1 %v864_v63, %s3986_s15 }
 0x19d   : > { %1138 = vrot.lane.b32.xlu0 %v864_v63, %s3987_s1 }
 0x1a4   : > { %900 = vrot.lane.b32.xlu2 %v886_v60, %s3989_s9  ;;  %1141 = vrot.lane.b32.xlu1 %v864_v63, %s3990_s8 }
 0x1a5   : > { %1153 = vrot.lane.b32.xlu0 %v864_v63, %s3992_s24 }
 0x1ac   : > { %1390 = vrot.lane.b32.xlu2 %v4321_v2, %s3986_s15  ;;  %906 = vrot.lane.b32.xlu1 %v886_v60, %s3992_s24 }
 0x1ad   : > { %903 = vrot.lane.b32.xlu0 %v886_v60, %s3991_s29 }
 0x1b4   : > { %1384 = vrot.lane.b32.xlu1 %v4321_v2, %s3987_s1 }
 0x1b5   : > { %1381 = vrot.lane.b32.xlu0 %v4321_v2, %s3988_s28 }
 0x1bd   : > { %1387 = vrot.lane.b32.xlu0 %v4321_v2, %s3990_s8 }
 0x1e6   : > { %v4333_v3 = vpop.permute.xlu2 %897 }
 0x1e7   : > { %v936_v19 = vrot.slane %v4333_v3, 4 }
 0x1ee   : > { %v1148_v7 = vpop.permute.xlu2 %1147 }
 0x1ef   : > { %v1194_v23 = vrot.slane %v1148_v7, 4 }
 0x1f6   : > { %v1151_v14 = vpop.permute.xlu2 %1150 }
 0x1f7   : > { %v1180_v20 = vrot.slane %v1151_v14, 4 }
 0x1fe   : > { %v892_v4 = vpop.permute.xlu1 %891  ;;  %v901_v50 = vpop.permute.xlu2 %900 }
 0x1ff   : > { %v889_v5 = vpop.permute.xlu0 %888  ;;  %v909_v15 = vrot.slane %v892_v4, 4  ;;  %v913_v24 = vsel %vm910_vm1, %v892_v4, %v912_v16  ;;  %v948_v0 = vrot.slane %v901_v50, 4 }
 0x200   : > { %v924_v29 = vrot.slane %v889_v5, 4  ;;  %v921_v51 = vperm.slane %v913_v24, %v4336_v21 }
 0x201   : > { %v911_v28 = vsel %vm910_vm1, %v909_v15, %v886_v60 }
 0x202   : > { %v917_v56 = vperm.slane %v911_v28, %v4336_v21 }
 0x206   : > { %v895_v6 = vpop.permute.xlu1 %894 }
 0x207   : > { %v1136_v8 = vpop.permute.xlu0 %1135  ;;  %v922_v38 = vrot.slane %v895_v6, 4  ;;  %v925_v42 = vsel %vm910_vm1, %v895_v6, %v924_v29 }
 0x208   : > { %v1170_v27 = vrot.slane %v1136_v8, 4  ;;  %v933_v59 = vperm.slane %v925_v42, %v4336_v21 }
 0x209   : > { %v923_v58 = vsel %vm910_vm1, %v922_v38, %v889_v5  ;;  %v960_v5 = vrot.slane %v917_v56, 4 }
 0x20a   : > { %v970_v15 = vrot.slane %v933_v59, 4 }
 0x20e   : > { %v1145_v9 = vpop.permute.xlu1 %1144 }
 0x20f   : > { %v1139_v10 = vpop.permute.xlu0 %1138  ;;  %v1182_v17 = vrot.slane %v1145_v9, 4  ;;  %v1181_v30 = vsel %vm910_vm1, %v1180_v20, %v1145_v9  ;;  %v929_v9 = vperm.slane %v923_v58, %v4336_v21 }
 0x210   : > { %v1156_v13 = vrot.slane %v1139_v10, 4  ;;  %v1159_v31 = vsel %vm910_vm1, %v1139_v10, %v1158_v18  ;;  %v1187_v43 = vperm.slane %v1181_v30, %v4336_v21 }
 0x211   : > { %v1183_v33 = vsel %vm910_vm1, %v1151_v14, %v1182_v17  ;;  %v1167_v44 = vperm.slane %v1159_v31, %v4336_v21  ;;  %v958_v26 = vrot.slane %v929_v9, 4 }
 0x212   : > { %v1157_v22 = vsel %vm910_vm1, %v1156_v13, %v864_v63  ;;  %v1191_v46 = vperm.slane %v1183_v33, %v4336_v21  ;;  %v1230_v60 = vrot.slane %v1187_v43, 4 }
 0x213   : > { %v1163_v34 = vperm.slane %v1157_v22, %v4336_v21  ;;  %v1218_v4 = vrot.slane %v1167_v44, 4  ;;  %v959_v42 = vsel %vm910_vm1, %v958_v26, %v917_v56 }
 0x214   : > { %v1242_v1 = vrot.slane %v1191_v46, 4 }
 0x215   : > { %v1206_v52 = vrot.slane %v1163_v34, 4 }
 0x216   : > { %v1142_v32 = vpop.permute.xlu1 %1141 }
 0x217   : > { %v1168_v35 = vrot.slane %v1142_v32, 4  ;;  %v1171_v36 = vsel %vm910_vm1, %v1142_v32, %v1170_v27  ;;  %v1154_v37 = vpop.permute.xlu0 %1153 }
 0x218   : > { %v1179_v39 = vperm.slane %v1171_v36, %v4336_v21  ;;  %v1192_v40 = vrot.slane %v1154_v37, 4  ;;  %v1195_v41 = vsel %vm910_vm1, %v1154_v37, %v1194_v23 }
 0x219   : > { %v1169_v45 = vsel %vm910_vm1, %v1168_v35, %v1136_v8  ;;  %v1203_v49 = vperm.slane %v1195_v41, %v4336_v21  ;;  %v972_v8 = vrot.slane %v921_v51, 4 }
 0x21a   : > { %v1175_v47 = vperm.slane %v1169_v45, %v4336_v21  ;;  %v1193_v48 = vsel %vm910_vm1, %v1192_v40, %v1148_v7  ;;  %v1216_v53 = vrot.slane %v1179_v39, 4  ;;  %v1219_v13 = vsel %vm910_vm1, %v1179_v39, %v1218_v4 }
 0x21b   : > { %v1199_v54 = vperm.slane %v1193_v48, %v4336_v21  ;;  %v1240_v6 = vrot.slane %v1203_v49, 4  ;;  %v1243_v14 = vsel %vm910_vm1, %v1203_v49, %v1242_v1  ;;  %v973_v20 = vsel %vm910_vm1, %v933_v59, %v972_v8 }
 0x21c   : > { %v1204_v61 = vrot.slane %v1175_v47, 4  ;;  %v1207_v62 = vsel %vm910_vm1, %v1175_v47, %v1206_v52  ;;  %v1217_v10 = vsel %vm910_vm1, %v1216_v53, %v1167_v44  ;;  %v1227_v27 = vperm.slane %v1219_v13, %v4359_v57 }
 0x21d   : > { %v1228_v63 = vrot.slane %v1199_v54, 4  ;;  %v1231_v11 = vsel %vm910_vm1, %v1199_v54, %v1230_v60  ;;  %v1215_v12 = vperm.slane %v1207_v62, %v4359_v57  ;;  %v1223_v22 = vperm.slane %v1217_v10, %v4359_v57 }
 0x21e   : > { %v907_v7 = vpop.permute.xlu1 %906  ;;  %v1205_v16 = vsel %vm910_vm1, %v1204_v61, %v1163_v34  ;;  %v1239_v23 = vperm.slane %v1231_v11, %v4359_v57  ;;  %v1241_v24 = vsel %vm910_vm1, %v1240_v6, %v1191_v46  ;;  %v1251_v28 = vperm.slane %v1243_v14, %v4359_v57 }
 0x21f   : > { %v1229_v17 = vsel %vm910_vm1, %v1228_v63, %v1187_v43  ;;  %v946_v18 = vrot.slane %v907_v7, 4  ;;  %v904_v25 = vpop.permute.xlu0 %903  ;;  %v1211_v30 = vperm.slane %v1205_v16, %v4359_v57  ;;  %v1258_v31 = vrot.slane %v1215_v12, 4 }
 0x220   : > { %v1235_v32 = vperm.slane %v1229_v17, %v4359_v57  ;;  %v949_v33 = vsel %vm910_vm1, %v907_v7, %v948_v0  ;;  %v1247_v34 = vperm.slane %v1241_v24, %v4359_v57  ;;  %v934_v36 = vrot.slane %v904_v25, 4 }
 0x221   : > { %v947_v29 = vsel %vm910_vm1, %v946_v18, %v901_v50  ;;  %v957_v35 = vperm.slane %v949_v33, %v4336_v21  ;;  %v937_v37 = vsel %vm910_vm1, %v904_v25, %v936_v19  ;;  %v1262_v38 = vrot.slane %v1223_v22, 4 }
 0x222   : > { %v1256_v39 = vrot.slane %v1239_v23, 4  ;;  %v953_v40 = vperm.slane %v947_v29, %v4336_v21  ;;  %v945_v41 = vperm.slane %v937_v37, %v4336_v21  ;;  %v961_v43 = vsel %vm910_vm1, %v929_v9, %v960_v5 }
 0x223   : > { %v971_v44 = vsel %vm910_vm1, %v970_v15, %v921_v51  ;;  %v935_v45 = vsel %vm910_vm1, %v934_v36, %v4333_v3  ;;  %v1254_v46 = vrot.slane %v1211_v30, 4  ;;  %v1266_v47 = vrot.slane %v1227_v27, 4 }
 0x224   : > { %v1264_v48 = vrot.slane %v1251_v28, 4  ;;  %v996_v49 = vrot.slane %v945_v41, 4  ;;  %v1252_v19 = vrot.slane %v1235_v32, 4  ;;  %v1259_v50 = vsel %vm910_vm1, %v1239_v23, %v1258_v31 }
 0x225   : > { %v1260_v52 = vrot.slane %v1247_v34, 4  ;;  %v994_v53 = vrot.slane %v957_v35, 4  ;;  %v1263_v54 = vsel %vm910_vm1, %v1247_v34, %v1262_v38  ;;  %v982_v58 = vrot.slane %v953_v40, 4 }
 0x226   : > { %v941_v56 = vperm.slane %v935_v45, %v4336_v21  ;;  %v1257_v59 = vsel %vm910_vm1, %v1256_v39, %v1215_v12  ;;  %v4399_v51 = vperm.slane %v959_v42, %v4359_v57  ;;  %v4402_v3 = vperm.slane %v961_v43, %v4359_v57 }
 0x227   : > { %v977_v60 = vperm.slane %v971_v44, %v4359_v57  ;;  %v981_v61 = vperm.slane %v973_v20, %v4359_v57  ;;  %v1265_v62 = vsel %vm910_vm1, %v1264_v48, %v1227_v27  ;;  %v1267_v63 = vsel %vm910_vm1, %v1251_v28, %v1266_v47 }
 0x228   : > { %v1280_v0 = vrot.slane %v1259_v50, 4  ;;  %v997_v1 = vsel %vm910_vm1, %v957_v35, %v996_v49  ;;  %v1261_v4 = vsel %vm910_vm1, %v1260_v52, %v1223_v22  ;;  %v1306_v6 = vrot.slane %v1263_v54, 4 }
 0x229   : > { %v995_v7 = vsel %vm910_vm1, %v994_v53, %v945_v41  ;;  %v1268_v8 = vrot.slane %v1257_v59, 4  ;;  %v983_v9 = vsel %vm910_vm1, %v982_v58, %v941_v56  ;;  %v984_v10 = vrot.slane %v941_v56, 4 }
 0x22a   : > { %v1253_v11 = vsel %vm910_vm1, %v1252_v19, %v1211_v30  ;;  %v1255_v5 = vsel %vm910_vm1, %v1235_v32, %v1254_v46  ;;  %v1020_v12 = vrot.slane %v981_v61, 4  ;;  %v1292_v13 = vrot.slane %v1265_v62, 4 }
 0x22b   : > { %v1304_v14 = vrot.slane %v1267_v63, 4  ;;  %v1005_v15 = vperm.slane %v997_v1, %v4359_v57  ;;  %v1008_v16 = vrot.slane %v4399_v51, 4  ;;  %v1012_v17 = vrot.slane %v4402_v3, 4 }
 0x22c   : > { %v1016_v18 = vrot.slane %v977_v60, 4  ;;  %v1001_v20 = vperm.slane %v995_v7, %v4359_v57  ;;  %v1294_v22 = vrot.slane %v1261_v4, 4  ;;  %v989_v23 = vperm.slane %v983_v9, %v4359_v57 }
 0x22d   : > { %v1269_v24 = vsel %vm910_vm1, %v1268_v8, %v1253_v11  ;;  %v1281_v25 = vsel %vm910_vm1, %v1280_v0, %v1255_v5  ;;  %v1307_v26 = vsel %vm910_vm1, %v1267_v63, %v1306_v6  ;;  %v985_v27 = vsel %vm910_vm1, %v953_v40, %v984_v10 }
 0x22e   : > { %v1282_v28 = vrot.slane %v1255_v5, 4  ;;  %v4424_v29 = vperm.slane %v1281_v25, %v4336_v21  ;;  %v4427_v30 = vsel %vm910_vm1, %v1005_v15, %v1020_v12  ;;  %v1270_v31 = vrot.slane %v1253_v11, 4 }
 0x22f   : > { %v1293_v32 = vsel %vm910_vm1, %v1292_v13, %v1261_v4  ;;  %v1305_v33 = vsel %vm910_vm1, %v1304_v14, %v1263_v54  ;;  %v1014_v34 = vrot.slane %v1001_v20, 4  ;;  %v4432_v35 = vperm.slane %v1269_v24, %v4336_v21 }
 0x230   : > { %v4435_v36 = vperm.slane %v1305_v33, %v4336_v21  ;;  %v1316_v37 = vrot.slane %v4424_v29, 4  ;;  %v993_v38 = vperm.slane %v985_v27, %v4359_v57  ;;  %v4440_v39 = vsel %vm910_vm1, %v989_v23, %v1008_v16 }
 0x231   : > { %v1018_v40 = vrot.slane %v1005_v15, 4  ;;  %v1283_v41 = vsel %vm910_vm1, %v1259_v50, %v1282_v28  ;;  %v1058_v42 = vrot.slane %v4427_v30, 4  ;;  %v4445_v43 = vperm.slane %v1293_v32, %v4336_v21 }
 0x232   : > { %v1317_v44 = vsel %vm910_vm1, %v1316_v37, %v4432_v35  ;;  %v1340_v45 = vrot.slane %v4435_v36, 4  ;;  %v1006_v46 = vrot.slane %v989_v23, 4  ;;  %v4451_v47 = vsel %vm910_vm1, %v1001_v20, %v1016_v18 }
 0x233   : > { %v1323_v48 = vperm.slane %v1317_v44, %v4359_v57  ;;  %v1271_v49 = vsel %vm910_vm1, %v1257_v59, %v1270_v31  ;;  %v4456_v19 = vsel %vm910_vm1, %v1014_v34, %v977_v60  ;;  %v1036_v50 = vrot.slane %v4440_v39, 4 }
 0x234   : > { %v1341_v52 = vsel %vm910_vm1, %v1340_v45, %v4445_v43  ;;  %v1291_v53 = vperm.slane %v1283_v41, %v4336_v21  ;;  %v4463_v54 = vsel %vm910_vm1, %v993_v38, %v1012_v17  ;;  %v1295_v63 = vsel %vm910_vm1, %v1265_v62, %v1294_v22 }
 0x235   : > { %v1347_v58 = vperm.slane %v1341_v52, %v4359_v57  ;;  %v1366_v56 = vrot.slane %v1323_v48, 4  ;;  %v4468_v59 = vsel %vm910_vm1, %v1018_v40, %v981_v61  ;;  %v1059_v60 = vsel %vm910_vm1, %v1058_v42, %v4451_v47 }
 0x236   : > { %v1279_v0 = vperm.slane %v1271_v49, %v4336_v21  ;;  %v1303_v1 = vperm.slane %v1295_v63, %v4336_v21  ;;  %v1010_v4 = vrot.slane %v993_v38, 4  ;;  %v1060_v6 = vrot.slane %v4451_v47, 4 }
 0x237   : > { %v1364_v7 = vrot.slane %v1347_v58, 4  ;;  %v1034_v8 = vrot.slane %v4463_v54, 4  ;;  %v1367_v9 = vsel %vm910_vm1, %v1347_v58, %v1366_v56  ;;  %v1315_v62 = vperm.slane %v1307_v26, %v4336_v21 }
 0x238   : > { %v1328_v61 = vrot.slane %v1291_v53, 4  ;;  %v1046_v10 = vrot.slane %v4468_v59, 4  ;;  %v4480_v11 = vperm.slane %v1059_v60, %v4336_v21  ;;  %v1318_v5 = vrot.slane %v4432_v35, 4 }
 0x239   : > { %v1365_v12 = vsel %vm910_vm1, %v1364_v7, %v1323_v48  ;;  %v1352_v14 = vrot.slane %v1315_v62, 4  ;;  %v1330_v15 = vrot.slane %v1279_v0, 4  ;;  %v1354_v16 = vrot.slane %v1303_v1, 4 }
 0x23a   : > { %3237 = vmatpush.xpose.msk.msrb.mxu0 %vm1626_vm2, %v1365_v12  ;;  %v1329_v13 = vsel %vm910_vm1, %v1328_v61, %v1279_v0  ;;  %v1342_v17 = vrot.slane %v4445_v43, 4  ;;  %v1007_v20 = vsel %vm910_vm1, %v1006_v46, %v4399_v51  ;;  %v1011_v22 = vsel %vm910_vm1, %v1010_v4, %v4402_v3 }
 0x23b   : > { %v1335_v18 = vperm.slane %v1329_v13, %v4359_v57  ;;  %v1353_v23 = vsel %vm910_vm1, %v1352_v14, %v1303_v1  ;;  %v1331_v24 = vsel %vm910_vm1, %v1291_v53, %v1330_v15  ;;  %v1355_v25 = vsel %vm910_vm1, %v1315_v62, %v1354_v16 }
 0x23c   : > { %v1022_v26 = vrot.slane %v1011_v22, 4  ;;  %v1359_v27 = vperm.slane %v1353_v23, %v4359_v57  ;;  %v4498_v31 = vperm.slane %v1331_v24, %v4359_v57  ;;  %v4501_v32 = vperm.slane %v1355_v25, %v4359_v57 }
 0x23d   : > { %v1374_v28 = vrot.slane %v1335_v18, 4  ;;  %v1048_v51 = vrot.slane %v4456_v19, 4  ;;  %v1035_v33 = vsel %vm910_vm1, %v1034_v8, %v4440_v39  ;;  %v1047_v34 = vsel %vm910_vm1, %v1046_v10, %v4456_v19 }
 0x23e   : > { %3239 = vmatpush.xpose.msk.msra.mxu0 %vm1626_vm2, %v1367_v9  ;;  %v1023_v3 = vsel %vm910_vm1, %v1022_v26, %v1007_v20  ;;  %v1372_v35 = vrot.slane %v1359_v27, 4  ;;  %v1376_v37 = vrot.slane %v4501_v32, 4  ;;  %v1024_v40 = vrot.slane %v1007_v20, 4 }
 0x23f   : > { %v1375_v38 = vsel %vm910_vm1, %v1359_v27, %v1374_v28  ;;  %v1029_v41 = vperm.slane %v1023_v3, %v4336_v21  ;;  %v1041_v42 = vperm.slane %v1035_v33, %v4336_v21  ;;  %v1053_v43 = vperm.slane %v1047_v34, %v4336_v21 }
 0x240   : > { %v1094_v44 = vrot.slane %v4480_v11, 4  ;;  %v1373_v45 = vsel %vm910_vm1, %v1372_v35, %v1335_v18  ;;  %v1377_v46 = vsel %vm910_vm1, %v1376_v37, %v4498_v31  ;;  %v1319_v47 = vsel %vm910_vm1, %v4424_v29, %v1318_v5 }
 0x241   : > { %v1343_v48 = vsel %vm910_vm1, %v4435_v36, %v1342_v17  ;;  %v1061_v49 = vsel %vm910_vm1, %v4427_v30, %v1060_v6  ;;  %3245 = vmatpush.xpose.msk.msrb.mxu2 %vm1626_vm2, %v1373_v45  ;;  %3249 = vmatpush.xpose.msk.msrb.mxu3 %vm1626_vm2, %v1377_v46  ;;  %v1070_v19 = vrot.slane %v1041_v42, 4  ;;  %v1327_v58 = vperm.slane %v1319_v47, %v4359_v57 }
 0x242   : > { %v1095_v52 = vsel %vm910_vm1, %v1094_v44, %v1053_v43  ;;  %v1351_v29 = vperm.slane %v1343_v48, %v4359_v57  ;;  %v1025_v36 = vsel %vm910_vm1, %v1011_v22, %v1024_v40  ;;  %v1037_v63 = vsel %vm910_vm1, %v4463_v54, %v1036_v50 }
 0x243   : > { %v1101_v53 = vperm.slane %v1095_v52, %v4359_v57  ;;  %v1071_v56 = vsel %vm910_vm1, %v1070_v19, %v1029_v41  ;;  %v1033_v30 = vperm.slane %v1025_v36, %v4336_v21  ;;  %v1049_v60 = vsel %vm910_vm1, %v4468_v59, %v1048_v51 }
 0x244   : > { %v1077_v0 = vperm.slane %v1071_v56, %v4359_v57  ;;  %v1368_v4 = vrot.slane %v1351_v29, 4  ;;  %v1045_v6 = vperm.slane %v1037_v63, %v4336_v21  ;;  %v1057_v7 = vperm.slane %v1049_v60, %v4336_v21 }
 0x245   : > { %3247 = vmatpush.xpose.msk.msra.mxu2 %vm1626_vm2, %v1375_v38  ;;  %v1118_v1 = vrot.slane %v1101_v53, 4  ;;  %v1069_v8 = vperm.slane %v1061_v49, %v4336_v21  ;;  %v1084_v9 = vrot.slane %v1033_v30, 4  ;;  %v1096_v10 = vrot.slane %v1053_v43, 4 }
 0x246   : > { %v1082_v39 = vrot.slane %v1045_v6, 4  ;;  %v1369_v50 = vsel %vm910_vm1, %v1368_v4, %v1327_v58  ;;  %v1108_v61 = vrot.slane %v1057_v7, 4  ;;  %v1072_v18 = vrot.slane %v1029_v41, 4 }
 0x247   : > { %v1119_v62 = vsel %vm910_vm1, %v1118_v1, %v1077_v0  ;;  %v1106_v54 = vrot.slane %v1069_v8, 4  ;;  %v1085_v59 = vsel %vm910_vm1, %v1045_v6, %v1084_v9  ;;  %v1120_v20 = vrot.slane %v1077_v0, 4  ;;  %v4598_v0 = vpop.permute.xlu2 %1390  ;;  %v1382_v1 = vpop.permute.xlu0 %1381 }
 0x248   : > { %3238 = vmatmul.msk.f32.vlgmr.msrb.gmra.mxu0 %vm1626_vm2, %v1119_v62  ;;  %v1083_v5 = vsel %vm910_vm1, %v1082_v39, %v1033_v30  ;;  %v1109_v13 = vsel %vm910_vm1, %v1069_v8, %v1108_v61  ;;  %v1093_v16 = vperm.slane %v1085_v59, %v4359_v57  ;;  %v1370_v24 = vrot.slane %v1327_v58, 4  ;;  %v1385_v6 = vpop.permute.xlu1 %1384 }
 0x249   : > { %3241 = vmatpush.xpose.msk.msrb.mxu0 %vm1626_vm2, %v1369_v50  ;;  %v1107_v12 = vsel %vm910_vm1, %v1106_v54, %v1057_v7  ;;  %v1089_v14 = vperm.slane %v1083_v5, %v4359_v57  ;;  %v1117_v17 = vperm.slane %v1109_v13, %v4359_v57  ;;  %v1097_v25 = vsel %vm910_vm1, %v4480_v11, %v1096_v10 }
 0x24a   : > { %v1113_v15 = vperm.slane %v1107_v12, %v4359_v57  ;;  %v1121_v28 = vsel %vm910_vm1, %v1101_v53, %v1120_v20  ;;  %v1105_v51 = vperm.slane %v1097_v25, %v4359_v57  ;;  %v1371_v3 = vsel %vm910_vm1, %v1351_v29, %v1370_v24 }
 0x24b   : > { %v1130_v23 = vrot.slane %v1117_v17, 4  ;;  %v1073_v33 = vsel %vm910_vm1, %v1041_v42, %v1072_v18  ;;  %v1128_v11 = vrot.slane %v1089_v14, 4  ;;  %v1378_v37 = vrot.slane %v4498_v31, 4 }
 0x24c   : > { %v1126_v22 = vrot.slane %v1113_v15, 4  ;;  %v1081_v34 = vperm.slane %v1073_v33, %v4359_v57  ;;  %v1122_v35 = vrot.slane %v1105_v51, 4  ;;  %v1132_v44 = vrot.slane %v1093_v16, 4 }
 0x24d   : > { %v1131_v27 = vsel %vm910_vm1, %v1130_v23, %v1093_v16  ;;  %v1129_v38 = vsel %vm910_vm1, %v1113_v15, %v1128_v11  ;;  %v1379_v41 = vsel %vm910_vm1, %v4501_v32, %v1378_v37  ;;  %v1416_v24 = vrot.slane %v1382_v1, 4 }
 0x24e   : > { %v1127_v26 = vsel %vm910_vm1, %v1126_v22, %v1089_v14  ;;  %3250 = vmatmul.msk.f32.vlgmr.msrb.gmra.mxu3 %vm1626_vm2, %v1131_v27  ;;  %v1123_v40 = vsel %vm910_vm1, %v1122_v35, %v1081_v34  ;;  %v1124_v42 = vrot.slane %v1081_v34, 4  ;;  %v1133_v31 = vsel %vm910_vm1, %v1117_v17, %v1132_v44 }
 0x24f   : > { %3246 = vmatmul.msk.f32.vlgmr.msrb.gmra.mxu2 %vm1626_vm2, %v1127_v26  ;;  %v1388_v9 = vpop.permute.xlu0 %1387  ;;  %v1404_v34 = vrot.slane %v4321_v2, 4 }
 0x250   : > { %3240 = vmatmul.msk.f32.vlgmr.msra.gmra.mxu0 %vm1626_vm2, %v1121_v28  ;;  %v1125_v43 = vsel %vm910_vm1, %v1105_v51, %v1124_v42  ;;  %v1414_v28 = vrot.slane %v1388_v9, 4  ;;  %v1417_v33 = vsel %vm910_vm1, %v1388_v9, %v1416_v24 }
 0x251   : > { %3243 = vmatpush.xpose.msk.msra.mxu0 %vm1626_vm2, %v1371_v3  ;;  %v1402_v3 = vrot.slane %v1385_v6, 4  ;;  %v1405_v35 = vsel %vm910_vm1, %v1385_v6, %v1404_v34 }
 0x252   : > { %v1415_v37 = vsel %vm910_vm1, %v1414_v28, %v1382_v1 }
 0x253   : > { %v1403_v42 = vsel %vm910_vm1, %v1402_v3, %v4321_v2 }
 0x257   : > { %3248 = vmatmul.msk.f32.vlgmr.msra.gmra.mxu2 %vm1626_vm2, %v1129_v38  ;;  %v1425_v38 = vperm.slane %v1417_v33, %v4336_v21 }
 0x258   : > { %3242 = vmatmul.msk.f32.vlgmr.msrb.gmra.mxu0 %vm1626_vm2, %v1123_v40 }
 0x259   : > { %3251 = vmatpush.xpose.msk.msrb.mxu0 %vm1626_vm2, %v1379_v41 }
 0x260   : > { %3244 = vmatmul.msk.f32.vlgmr.msra.gmra.mxu0 %vm1626_vm2, %v1125_v43 }
 0x268   : > { %3252 = vmatmul.msk.f32.vlgmr.msrb.gmra.mxu0 %vm1626_vm2, %v1133_v31 }
 0x2c5   : > { %v1650_v45 = vpop.f32.mrf.mxu0 }
 0x2c6   : > { %v1836_v46 = vsel %vm1835_vm3, %v1650_v45, -inf }
 0x2c7   : > { %1837 = vmax.xlane.f32.xlu2 %v1836_v46  ;;  %v1421_v46 = vperm.slane %v1415_v37, %v4336_v21 }
 0x2cd   : > { %v1676_v47 = vpop.f32.mrf.mxu0 }
 0x2ce   : > { %v1839_v32 = vsel %vm1835_vm3, %v1676_v47, -inf }
 0x2cf   : > { %1840 = vmax.xlane.f32.xlu1 %v1839_v32 }
 0x2d1   : > { %v1806_v49 = vpop.f32.mrf.mxu3 }
 0x2d2   : > { %v4583_v48 = vpop.f32.mrf.mxu2  ;;  %v1854_v19 = vsel %vm1835_vm3, %v1806_v49, -inf }
 0x2d3   : > { %1855 = vmax.xlane.f32.xlu2 %v1854_v19  ;;  %v1848_v53 = vsel %vm1835_vm3, %v4583_v48, -inf }
 0x2d5   : > { %v1702_v52 = vpop.f32.mrf.mxu0 }
 0x2d6   : > { %v1842_v58 = vsel %vm1835_vm3, %v1702_v52, -inf }
 0x2d7   : > { %1849 = vmax.xlane.f32.xlu1 %v1848_v53  ;;  %1843 = vmax.xlane.f32.xlu0 %v1842_v58  ;;  %v1450_v53 = vrot.slane %v1421_v46, 4 }
 0x2da   : > { %v1780_v29 = vpop.f32.mrf.mxu2 }
 0x2db   : > { %v1851_v56 = vsel %vm1835_vm3, %v1780_v29, -inf }
 0x2dd   : > { %v1728_v36 = vpop.f32.mrf.mxu0 }
 0x2de   : > { %v1845_v30 = vsel %vm1835_vm3, %v1728_v36, -inf }
 0x2df   : > { %1852 = vmax.xlane.f32.xlu0 %v1851_v56  ;;  %1846 = vmax.xlane.f32.xlu2 %v1845_v30 }
 0x2e5   : > { %v1832_v63 = vpop.f32.mrf.mxu0 }
 0x2e6   : > { %v1857_v60 = vsel %vm1835_vm3, %v1832_v63, -inf }
 0x2e7   : > { %1858 = vmax.xlane.f32.xlu2 %v1857_v60 }
 0x2f0   : > { %1393 = vrot.lane.b32.xlu1 %v4321_v2, %s3989_s9 }
 0x2f3   : > { %1396 = vrot.lane.b32.xlu0 %v4321_v2, %s3991_s29 }
 0x2ff   : > { %1399 = vrot.lane.b32.xlu2 %v4321_v2, %s3992_s24 }
 0x33a   : > { %v1838_v4 = vpop.xlane.xlu2 %1837 }
 0x33b   : > { %v1860_v7 = vsub.f32 %v1650_v45, %v1838_v4  ;;  %v1413_v45 = vperm.slane %v1405_v35, %v4336_v21  ;;  %v1428_v4 = vrot.slane %v4598_v0, 4 }
 0x33d   : > { %v1868_v8 = vmul.f32 1.442695, %v1860_v7 }
 0x33f   : > { %3569 = vpow2.f32 %v1868_v8 }
 0x342   : > { %v1841_v62 = vpop.xlane.xlu1 %1840 }
 0x343   : > { %v1861_v39 = vsub.f32 %v1676_v47, %v1841_v62 }
 0x345   : > { %v4600_v50 = vpop.eup %3569  ;;  %v1870_v54 = vmul.f32 1.442695, %v1861_v39 }
 0x346   : > { %v1884_v59 = vsel %vm1835_vm3, %v4600_v50, 0.0  ;;  %v1856_v61 = vpop.xlane.xlu2 %1855 }
 0x347   : > { %1885 = vadd.xlane.f32.xlu1 %v1884_v59  ;;  %3571 = vpow2.f32 %v1870_v54  ;;  %v1866_v14 = vsub.f32 %v1806_v49, %v1856_v61  ;;  %v1462_v49 = vrot.slane %v1425_v38, 4 }
 0x349   : > { %v1880_v16 = vmul.f32 1.442695, %v1866_v14 }
 0x34a   : > { %v1844_v10 = vpop.xlane.xlu0 %1843  ;;  %v1850_v20 = vpop.xlane.xlu1 %1849 }
 0x34b   : > { %v1862_v5 = vsub.f32 %v1702_v52, %v1844_v10  ;;  %v1864_v51 = vsub.f32 %v4583_v48, %v1850_v20  ;;  %v1409_v48 = vperm.slane %v1403_v42, %v4336_v21 }
 0x34d   : > { %v4604_v12 = vpop.eup %3571  ;;  %v1872_v13 = vmul.f32 1.442695, %v1862_v5  ;;  %v1876_v40 = vmul.f32 1.442695, %v1864_v51  ;;  %v1452_v58 = vrot.slane %v1409_v48, 4  ;;  %v1451_v9 = vsel %vm910_vm1, %v1450_v53, %v1409_v48 }
 0x34e   : > { %v1887_v15 = vsel %vm1835_vm3, %v4604_v12, 0.0 }
 0x34f   : > { %1888 = vadd.xlane.f32.xlu2 %v1887_v15  ;;  %3573 = vpow2.f32 %v1872_v13  ;;  %v1453_v6 = vsel %vm910_vm1, %v1421_v46, %v1452_v58 }
 0x350   : > { %3575 = vpow2.f32 %v1880_v16  ;;  %v1461_v24 = vperm.slane %v1453_v6, %v4359_v57 }
 0x352   : > { %v1853_v17 = vpop.xlane.xlu0 %1852  ;;  %v1847_v18 = vpop.xlane.xlu2 %1846 }
 0x353   : > { %v1865_v22 = vsub.f32 %v1780_v29, %v1853_v17  ;;  %v1863_v23 = vsub.f32 %v1728_v36, %v1847_v18  ;;  %v1464_v29 = vrot.slane %v1413_v45, 4  ;;  %v1463_v36 = vsel %vm910_vm1, %v1462_v49, %v1413_v45 }
 0x354   : > { %v1469_v62 = vperm.slane %v1463_v36, %v4359_v57  ;;  %v1457_v18 = vperm.slane %v1451_v9, %v4359_v57 }
 0x355   : > { %v1878_v25 = vmul.f32 1.442695, %v1865_v22  ;;  %v1874_v26 = vmul.f32 1.442695, %v1863_v23  ;;  %v4608_v27 = vpop.eup %3573  ;;  %v1465_v7 = vsel %vm910_vm1, %v1425_v38, %v1464_v29 }
 0x356   : > { %v1890_v11 = vsel %vm1835_vm3, %v4608_v27, 0.0  ;;  %v4620_v44 = vpop.eup %3575  ;;  %v1473_v14 = vperm.slane %v1465_v7, %v4359_v57  ;;  %v1508_v28 = vrot.slane %v1469_v62, 4  ;;  %v1500_v35 = vrot.slane %v1457_v18, 4 }
 0x357   : > { %3577 = vpow2.f32 %v1878_v25  ;;  %1891 = vadd.xlane.f32.xlu0 %v1890_v11  ;;  %v1902_v2 = vsel %vm1835_vm3, %v4620_v44, 0.0 }
 0x358   : > { %3579 = vpow2.f32 %v1874_v26  ;;  %v1512_v37 = vrot.slane %v1473_v14, 4 }
 0x359   : > { %3581 = vpow2.f32 %v1876_v40  ;;  %v1504_v40 = vrot.slane %v1461_v24, 4 }
 0x35a   : > { %v1859_v41 = vpop.xlane.xlu2 %1858 }
 0x35b   : > { %v1867_v43 = vsub.f32 %v1832_v63, %v1859_v41 }
 0x35d   : > { %v4622_v31 = vpop.eup %3577  ;;  %v1882_v47 = vmul.f32 1.442695, %v1867_v43 }
 0x35e   : > { %v4626_v32 = vpop.eup %3579  ;;  %v1899_v19 = vsel %vm1835_vm3, %v4622_v31, 0.0 }
 0x35f   : > { %3583 = vpow2.f32 %v1882_v47  ;;  %v1893_v52 = vsel %vm1835_vm3, %v4626_v32, 0.0  ;;  %1900 = vadd.xlane.f32.xlu2 %v1899_v19  ;;  %1903 = vadd.xlane.f32.xlu0 %v1902_v2  ;;  %v4636_v1 = vpop.eup %3581 }
 0x360   : > { %1894 = vadd.xlane.f32.xlu1 %v1893_v52  ;;  %v1896_v16 = vsel %vm1835_vm3, %v4636_v1, 0.0 }
 0x362   : > { %v1394_v56 = vpop.permute.xlu1 %1393  ;;  %v1400_v30 = vpop.permute.xlu2 %1399 }
 0x363   : > { %v1440_v63 = vrot.slane %v1394_v56, 4  ;;  %v1438_v60 = vrot.slane %v1400_v30, 4 }
 0x365   : > { %v4641_v8 = vpop.eup %3583  ;;  %v1439_v39 = vsel %vm910_vm1, %v1438_v60, %v1394_v56  ;;  %v1441_v54 = vsel %vm910_vm1, %v1400_v30, %v1440_v63  ;;  %v1397_v59 = vpop.permute.xlu0 %1396 }
 0x366   : > { %v1445_v61 = vperm.slane %v1439_v39, %v4336_v21  ;;  %v1449_v10 = vperm.slane %v1441_v54, %v4336_v21  ;;  %v1426_v5 = vrot.slane %v1397_v59, 4  ;;  %v1429_v13 = vsel %vm910_vm1, %v1397_v59, %v1428_v4 }
 0x367   : > { %v1437_v15 = vperm.slane %v1429_v13, %v4336_v21  ;;  %v1905_v17 = vsel %vm1835_vm3, %v4641_v8, 0.0 }
 0x368   : > { %v1474_v20 = vrot.slane %v1445_v61, 4  ;;  %v1486_v22 = vrot.slane %v1449_v10, 4  ;;  %v1427_v23 = vsel %vm910_vm1, %v1426_v5, %v4598_v0  ;;  %1897 = vadd.xlane.f32.xlu1 %v1896_v16  ;;  %1906 = vadd.xlane.f32.xlu0 %v1905_v17 }
 0x369   : > { %v1433_v25 = vperm.slane %v1427_v23, %v4336_v21  ;;  %v1488_v26 = vrot.slane %v1437_v15, 4 }
 0x36a   : > { %v1487_v51 = vsel %vm910_vm1, %v1486_v22, %v1437_v15 }
 0x36b   : > { %v1475_v3 = vsel %vm910_vm1, %v1474_v20, %v1433_v25  ;;  %v1476_v33 = vrot.slane %v1433_v25, 4  ;;  %v1489_v11 = vsel %vm910_vm1, %v1449_v10, %v1488_v26  ;;  %v1493_v34 = vperm.slane %v1487_v51, %v4359_v57 }
 0x36c   : > { %v1481_v0 = vperm.slane %v1475_v3, %v4359_v57  ;;  %v1497_v38 = vperm.slane %v1489_v11, %v4359_v57 }
 0x36d   : > { %v1477_v41 = vsel %vm910_vm1, %v1445_v61, %v1476_v33  ;;  %v1506_v42 = vrot.slane %v1493_v34, 4  ;;  %v1509_v43 = vsel %vm910_vm1, %v1493_v34, %v1508_v28 }
 0x36e   : > { %v1485_v45 = vperm.slane %v1477_v41, %v4359_v57  ;;  %v1498_v46 = vrot.slane %v1481_v0, 4  ;;  %v1501_v47 = vsel %vm910_vm1, %v1481_v0, %v1500_v35  ;;  %v1510_v48 = vrot.slane %v1497_v38, 4 }
 0x36f   : > { %v1507_v49 = vsel %vm910_vm1, %v1506_v42, %v1469_v62  ;;  %v1513_v19 = vsel %vm910_vm1, %v1497_v38, %v1512_v37  ;;  %v1552_v2 = vrot.slane %v1509_v43, 4  ;;  %v1528_v52 = vrot.slane %v1501_v47, 4 }
 0x370   : > { %v1502_v53 = vrot.slane %v1485_v45, 4  ;;  %v1540_v58 = vrot.slane %v1507_v49, 4  ;;  %v1550_v29 = vrot.slane %v1513_v19, 4  ;;  %v1499_v36 = vsel %vm910_vm1, %v1498_v46, %v1457_v18 }
 0x371   : > { %v1505_v56 = vsel %vm910_vm1, %v1485_v45, %v1504_v40  ;;  %v1511_v30 = vsel %vm910_vm1, %v1510_v48, %v1473_v14  ;;  %v1516_v63 = vrot.slane %v1499_v36, 4  ;;  %v1553_v60 = vsel %vm910_vm1, %v1513_v19, %v1552_v2 }
 0x372   : > { %v1551_v4 = vsel %vm910_vm1, %v1550_v29, %v1509_v43  ;;  %v1503_v6 = vsel %vm910_vm1, %v1502_v53, %v1461_v24  ;;  %v1526_v7 = vrot.slane %v1505_v56, 4  ;;  %v1529_v9 = vsel %vm910_vm1, %v1505_v56, %v1528_v52 }
 0x373   : > { %v1557_v62 = vperm.slane %v1551_v4, %v4336_v21  ;;  %v1514_v39 = vrot.slane %v1503_v6, 4  ;;  %v1517_v54 = vsel %vm910_vm1, %v1503_v6, %v1516_v63  ;;  %v1537_v59 = vperm.slane %v1529_v9, %v4336_v21 }
 0x374   : > { %v1525_v61 = vperm.slane %v1517_v54, %v4336_v21  ;;  %v1538_v10 = vrot.slane %v1511_v30, 4  ;;  %v1541_v5 = vsel %vm910_vm1, %v1511_v30, %v1540_v58  ;;  %v1561_v13 = vperm.slane %v1553_v60, %v4336_v21 }
 0x375   : > { %v1549_v14 = vperm.slane %v1541_v5, %v4336_v21  ;;  %v1574_v15 = vrot.slane %v1537_v59, 4  ;;  %v1515_v16 = vsel %vm910_vm1, %v1514_v39, %v1499_v36  ;;  %v1527_v17 = vsel %vm910_vm1, %v1526_v7, %v1501_v47 }
 0x376   : > { %v1576_v18 = vrot.slane %v1525_v61, 4  ;;  %v1598_v20 = vrot.slane %v1561_v13, 4  ;;  %v1521_v22 = vperm.slane %v1515_v16, %v4336_v21  ;;  %v1533_v23 = vperm.slane %v1527_v17, %v4336_v21 }
 0x377   : > { %v1575_v24 = vsel %vm910_vm1, %v1574_v15, %v1525_v61  ;;  %v1539_v25 = vsel %vm910_vm1, %v1538_v10, %v1507_v49  ;;  %v1586_v26 = vrot.slane %v1557_v62, 4  ;;  %v1600_v28 = vrot.slane %v1549_v14, 4 }
 0x378   : > { %v1581_v51 = vperm.slane %v1575_v24, %v4359_v57  ;;  %v1599_v3 = vsel %vm910_vm1, %v1598_v20, %v1549_v14  ;;  %v1545_v33 = vperm.slane %v1539_v25, %v4336_v21  ;;  %v1562_v11 = vrot.slane %v1533_v23, 4 }
 0x379   : > { %v1605_v34 = vperm.slane %v1599_v3, %v4359_v57  ;;  %v1564_v35 = vrot.slane %v1521_v22, 4  ;;  %v1577_v37 = vsel %vm910_vm1, %v1537_v59, %v1576_v18  ;;  %v1601_v41 = vsel %vm910_vm1, %v1561_v13, %v1600_v28 }
 0x37a   : > { %v1563_v0 = vsel %vm910_vm1, %v1562_v11, %v1521_v22  ;;  %v1587_v38 = vsel %vm910_vm1, %v1586_v26, %v1545_v33  ;;  %v1588_v40 = vrot.slane %v1545_v33, 4  ;;  %v1620_v47 = vrot.slane %v1581_v51, 4 }
 0x37b   : > { %v1618_v42 = vrot.slane %v1605_v34, 4  ;;  %v1569_v43 = vperm.slane %v1563_v0, %v4359_v57  ;;  %v1593_v45 = vperm.slane %v1587_v38, %v4359_v57  ;;  %v1565_v46 = vsel %vm910_vm1, %v1533_v23, %v1564_v35 }
 0x37c   : > { %v1573_v48 = vperm.slane %v1565_v46, %v4359_v57  ;;  %v1589_v49 = vsel %vm910_vm1, %v1557_v62, %v1588_v40  ;;  %v1585_v19 = vperm.slane %v1577_v37, %v4359_v57  ;;  %v1609_v36 = vperm.slane %v1601_v41, %v4359_v57 }
 0x37d   : > { %v1619_v2 = vsel %vm910_vm1, %v1618_v42, %v1581_v51  ;;  %v1610_v52 = vrot.slane %v1593_v45, 4  ;;  %v1612_v53 = vrot.slane %v1569_v43, 4  ;;  %v1597_v58 = vperm.slane %v1589_v49, %v4359_v57 }
 0x37e   : > { %2138 = vmatpush.msrb.mxu1 %v1619_v2  ;;  %v1616_v29 = vrot.slane %v1573_v48, 4  ;;  %v1624_v56 = vrot.slane %v1585_v19, 4  ;;  %v1621_v4 = vsel %vm910_vm1, %v1605_v34, %v1620_v47  ;;  %v1622_v7 = vrot.slane %v1609_v36, 4 }
 0x37f   : > { %v1611_v30 = vsel %vm910_vm1, %v1610_v52, %v1569_v43  ;;  %v1613_v63 = vsel %vm910_vm1, %v1593_v45, %v1612_v53  ;;  %v1614_v60 = vrot.slane %v1597_v58, 4 }
 0x380   : > { %2046 = vmatpush.msra.mxu3 %v1611_v30  ;;  %2069 = vmatpush.msrb.mxu2 %v1613_v63  ;;  %v1617_v6 = vsel %vm910_vm1, %v1597_v58, %v1616_v29  ;;  %v1625_v62 = vsel %vm910_vm1, %v1609_v36, %v1624_v56  ;;  %v1623_v39 = vsel %vm910_vm1, %v1622_v7, %v1585_v19 }
 0x381   : > { %v1615_v9 = vsel %vm910_vm1, %v1614_v60, %v1573_v48  ;;  %2115 = vmatpush.msra.mxu0 %v1617_v6 }
 0x382   : > { %2161 = vmatpush.msra.mxu2 %v1621_v4  ;;  %2092 = vmatpush.msrb.mxu3 %v1615_v9 }
 0x383   : > { %2207 = vmatpush.msrb.mxu0 %v1625_v62 }
 0x3ba   : > { %v1886_v54 = vpop.xlane.xlu1 %1885 }
 0x3bb   : > { %3585 = vrcp.f32 %v1886_v54  ;;  %v1919_v13 = vand.u32 2147483648, %v1886_v54  ;;  %v1917_v15 = vand.u32 2147483647, %v1886_v54  ;;  %vm1913_vm5 = vweird.f32 %v1886_v54 }
 0x3bd   : > { %v1920_v17 = vor.u32 1.1754944e-38, %v1919_v13  ;;  %vm1918_vm7 = vcmp.eq.f32.partialorder %v1917_v15, 8.507059e+37 }
 0x3c1   : > { %v3586_v59 = vpop.eup %3585 }
 0x3c2   : > { %v1909_v61 = vmul.f32 %v3586_v59, %v1886_v54  ;;  %v1889_v10 = vpop.xlane.xlu2 %1888  ;;  %vm1914_vm4 = vweird.f32 %v3586_v59 }
 0x3c3   : > { %3587 = vrcp.f32 %v1889_v10  ;;  %vm1915_vm6 = vmor %vm1913_vm5, %vm1914_vm4  ;;  %v1934_v51 = vand.u32 2147483648, %v1889_v10  ;;  %vm1928_vm9 = vweird.f32 %v1889_v10  ;;  %v1932_v33 = vand.u32 2147483647, %v1889_v10 }
 0x3c4   : > { %v1910_v5 = vsub.f32 1.0, %v1909_v61 }
 0x3c5   : > { %v1935_v37 = vor.u32 1.1754944e-38, %v1934_v51  ;;  %vm1933_vm11 = vcmp.eq.f32.partialorder %v1932_v33, 8.507059e+37 }
 0x3c6   : > { %v1911_v14 = vmul.f32 %v3586_v59, %v1910_v5 }
 0x3c8   : > { %v1912_v16 = vadd.f32 %v3586_v59, %v1911_v14 }
 0x3c9   : > { %v3588_v18 = vpop.eup %3587 }
 0x3ca   : > { %v1916_v20 = vsel %vm1915_vm6, %v3586_v59, %v1912_v16  ;;  %v1924_v23 = vmul.f32 %v3588_v18, %v1889_v10  ;;  %v1892_v24 = vpop.xlane.xlu0 %1891  ;;  %vm1929_vm8 = vweird.f32 %v3588_v18 }
 0x3cb   : > { %v1921_v22 = vsel %vm1918_vm7, %v1920_v17, %v1916_v20  ;;  %3589 = vrcp.f32 %v1892_v24  ;;  %vm1930_vm10 = vmor %vm1928_vm9, %vm1929_vm8  ;;  %v1947_v42 = vand.u32 2147483647, %v1892_v24  ;;  %v1949_v43 = vand.u32 2147483648, %v1892_v24 }
 0x3cc   : > { %v1922_v25 = vmul.f32 %v4600_v50, %v1921_v22  ;;  %v1925_v26 = vsub.f32 1.0, %v1924_v23  ;;  %vm1943_vm13 = vweird.f32 %v1892_v24 }
 0x3cd   : > { %vm4727_vm15 = vcmp.eq.f32.partialorder %v1947_v42, 8.507059e+37  ;;  %v1950_v52 = vor.u32 1.1754944e-38, %v1949_v43 }
 0x3ce   : > { %3253 = vmatmul.msk.f32.vlgmr.msra.gmra.mxu3 %vm1835_vm3, %v1922_v25  ;;  %v1926_v28 = vmul.f32 %v3588_v18, %v1925_v26 }
 0x3cf   : > { %2184 = vmatpush.msra.mxu3 %v1623_v39 }
 0x3d0   : > { %v1927_v3 = vadd.f32 %v3588_v18, %v1926_v28 }
 0x3d1   : > { %v3590_v11 = vpop.eup %3589 }
 0x3d2   : > { %v1931_v34 = vsel %vm1930_vm10, %v3588_v18, %v1927_v3  ;;  %v1901_v35 = vpop.xlane.xlu2 %1900  ;;  %v1939_v0 = vmul.f32 %v3590_v11, %v1892_v24  ;;  %v1904_v38 = vpop.xlane.xlu0 %1903  ;;  %vm1944_vm12 = vweird.f32 %v3590_v11 }
 0x3d3   : > { %v4719_v40 = vpop.xlane.xlu1 %1894  ;;  %3591 = vrcp.f32 %v1901_v35  ;;  %v1936_v50 = vsel %vm1933_vm11, %v1935_v37, %v1931_v34  ;;  %vm4723_vm14 = vmor %vm1943_vm13, %vm1944_vm12  ;;  %vm2003_vm4 = vweird.f32 %v1904_v38  ;;  %v2007_v36 = vand.u32 2147483647, %v1904_v38 }
 0x3d4   : > { %3593 = vrcp.f32 %v1904_v38  ;;  %v1940_v41 = vsub.f32 1.0, %v1939_v0  ;;  %v1937_v46 = vmul.f32 %v4604_v12, %v1936_v50  ;;  %v2009_v63 = vand.u32 2147483648, %v1904_v38 }
 0x3d5   : > { %3595 = vrcp.f32 %v4719_v40  ;;  %v1992_v6 = vand.u32 2147483647, %v1901_v35  ;;  %v1994_v9 = vand.u32 2147483648, %v1901_v35  ;;  %v1962_v61 = vand.u32 2147483647, %v4719_v40 }
 0x3d6   : > { %v1941_v45 = vmul.f32 %v3590_v11, %v1940_v41  ;;  %3254 = vmatmul.msk.f32.vlgmr.msrb.gmra.mxu2 %vm1835_vm3, %v1937_v46  ;;  %v1964_v10 = vand.u32 2147483648, %v4719_v40  ;;  %vm1988_vm8 = vweird.f32 %v1901_v35  ;;  %vm1958_vm9 = vweird.f32 %v4719_v40 }
 0x3d7   : > { %v1995_v15 = vor.u32 1.1754944e-38, %v1994_v9  ;;  %v2010_v17 = vor.u32 1.1754944e-38, %v2009_v63  ;;  %vm1993_vm12 = vcmp.eq.f32.partialorder %v1992_v6, 8.507059e+37  ;;  %vm2008_vm13 = vcmp.eq.f32.partialorder %v2007_v36, 8.507059e+37 }
 0x3d8   : > { %v1942_v48 = vadd.f32 %v3590_v11, %v1941_v45  ;;  %v1965_v24 = vor.u32 1.1754944e-38, %v1964_v10 }
 0x3d9   : > { %v3592_v47 = vpop.eup %3591 }
 0x3da   : > { %v3594_v49 = vpop.eup %3593  ;;  %v1984_v53 = vmul.f32 %v3592_v47, %v1901_v35  ;;  %v1946_v12 = vsel %vm4723_vm14, %v3590_v11, %v1942_v48  ;;  %vm1989_vm5 = vweird.f32 %v3592_v47 }
 0x3db   : > { %v3596_v58 = vpop.eup %3595  ;;  %v1999_v29 = vmul.f32 %v3594_v49, %v1904_v38  ;;  %v4734_v56 = vpop.xlane.xlu1 %1897  ;;  %v1951_v62 = vsel %vm4727_vm15, %v1950_v52, %v1946_v12  ;;  %vm2004_vm6 = vweird.f32 %v3594_v49  ;;  %vm1990_vm10 = vmor %vm1988_vm8, %vm1989_vm5  ;;  %vm1963_vm15 = vcmp.eq.f32.partialorder %v1962_v61, 8.507059e+37 }
 0x3dc   : > { %v4736_v30 = vpop.xlane.xlu0 %1906  ;;  %v1954_v60 = vmul.f32 %v3596_v58, %v4719_v40  ;;  %v1985_v4 = vsub.f32 1.0, %v1984_v53  ;;  %3597 = vrcp.f32 %v4734_v56  ;;  %vm1959_vm7 = vweird.f32 %v3596_v58  ;;  %vm2005_vm11 = vmor %vm2003_vm4, %vm2004_vm6 }
 0x3dd   : > { %v2000_v7 = vsub.f32 1.0, %v1999_v29  ;;  %3599 = vrcp.f32 %v4736_v30  ;;  %v1952_v16 = vmul.f32 %v4608_v27, %v1951_v62  ;;  %vm1960_vm14 = vmor %vm1958_vm9, %vm1959_vm7  ;;  %v1979_v37 = vand.u32 2147483648, %v4734_v56 }
 0x3de   : > { %v1955_v39 = vsub.f32 1.0, %v1954_v60  ;;  %v1986_v54 = vmul.f32 %v3592_v47, %v1985_v4  ;;  %v1977_v50 = vand.u32 2147483647, %v4734_v56  ;;  %v2024_v41 = vand.u32 2147483648, %v4736_v30 }
 0x3df   : > { %v2001_v59 = vmul.f32 %v3594_v49, %v2000_v7  ;;  %3255 = vmatmul.msk.f32.vlgmr.msrb.gmra.mxu3 %vm1835_vm3, %v1952_v16  ;;  %vm1973_vm6 = vweird.f32 %v4734_v56  ;;  %v1980_v43 = vor.u32 1.1754944e-38, %v1979_v37  ;;  %vm2018_vm8 = vweird.f32 %v4736_v30 }
 0x3e0   : > { %v1956_v5 = vmul.f32 %v3596_v58, %v1955_v39  ;;  %v1987_v13 = vadd.f32 %v3592_v47, %v1986_v54  ;;  %vm1978_vm9 = vcmp.eq.f32.partialorder %v1977_v50, 8.507059e+37 }
 0x3e1   : > { %v2002_v14 = vadd.f32 %v3594_v49, %v2001_v59 }
 0x3e2   : > { %v1957_v18 = vadd.f32 %v3596_v58, %v1956_v5  ;;  %v1991_v20 = vsel %vm1990_vm10, %v3592_v47, %v1987_v13  ;;  %v3598_v22 = vpop.eup %3597 }
 0x3e3   : > { %v2006_v23 = vsel %vm2005_vm11, %v3594_v49, %v2002_v14  ;;  %v1996_v25 = vsel %vm1993_vm12, %v1995_v15, %v1991_v20  ;;  %v3600_v26 = vpop.eup %3599  ;;  %v1969_v27 = vmul.f32 %v3598_v22, %v4734_v56  ;;  %vm1974_vm4 = vweird.f32 %v3598_v22 }
 0x3e4   : > { %v2011_v28 = vsel %vm2008_vm13, %v2010_v17, %v2006_v23  ;;  %v1961_v51 = vsel %vm1960_vm14, %v3596_v58, %v1957_v18  ;;  %v2014_v33 = vmul.f32 %v3600_v26, %v4736_v30  ;;  %v1997_v11 = vmul.f32 %v4622_v31, %v1996_v25  ;;  %vm1975_vm7 = vmor %vm1973_vm6, %vm1974_vm4 }
 0x3e5   : > { %v1966_v3 = vsel %vm1963_vm15, %v1965_v24, %v1961_v51  ;;  %v1970_v34 = vsub.f32 1.0, %v1969_v27  ;;  %v2012_v38 = vmul.f32 %v4620_v44, %v2011_v28  ;;  %vm2019_vm5 = vweird.f32 %v3600_v26 }
 0x3e6   : > { %v1967_v35 = vmul.f32 %v4626_v32, %v1966_v3  ;;  %v2015_v0 = vsub.f32 1.0, %v2014_v33  ;;  %3258 = vmatmul.msk.f32.vlgmr.msra.gmra.mxu2 %vm1835_vm3, %v1997_v11  ;;  %v2022_v31 = vand.u32 2147483647, %v4736_v30  ;;  %vm2020_vm10 = vmor %vm2018_vm8, %vm2019_vm5  ;;  %v2025_v44 = vor.u32 1.1754944e-38, %v2024_v41 }
 0x3e7   : > { %v1971_v40 = vmul.f32 %v3598_v22, %v1970_v34  ;;  %3259 = vmatmul.msk.f32.vlgmr.msra.gmra.mxu3 %vm1835_vm3, %v2012_v38  ;;  %vm2470_vm12 = vcmask 654336   ;;  %vm2472_vm13 = vcmask 785408   ;;  %vm2474_vm14 = vcmask 916480  }
 0x3e8   : > { %3256 = vmatmul.msk.f32.vlgmr.msra.gmra.mxu0 %vm1835_vm3, %v1967_v35  ;;  %v2016_v42 = vmul.f32 %v3600_v26, %v2015_v0  ;;  %vm2023_vm11 = vcmp.eq.f32.partialorder %v2022_v31, 8.507059e+37 }
 0x3e9   : > { %v1972_v32 = vadd.f32 %v3598_v22, %v1971_v40 }
 0x3ea   : > { %v2017_v45 = vadd.f32 %v3600_v26, %v2016_v42 }
 0x3eb   : > { %v1976_v46 = vsel %vm1975_vm7, %v3598_v22, %v1972_v32 }
 0x3ec   : > { %v2021_v47 = vsel %vm2020_vm10, %v3600_v26, %v2017_v45  ;;  %v1981_v48 = vsel %vm1978_vm9, %v1980_v43, %v1976_v46 }
 0x3ed   : > { %v2026_v49 = vsel %vm2023_vm11, %v2025_v44, %v2021_v47  ;;  %v1982_v19 = vmul.f32 %v4636_v1, %v1981_v48 }
 0x3ee   : > { %v2027_v2 = vmul.f32 %v4641_v8, %v2026_v49 }
 0x3ef   : > { %3257 = vmatmul.msk.f32.vlgmr.msrb.gmra.mxu1 %vm1835_vm3, %v1982_v19 }
 0x3f0   : > { %3260 = vmatmul.msk.f32.vlgmr.msrb.gmra.mxu0 %vm1835_vm3, %v2027_v2  ;;  %vm2468_vm3 = vcmask 523264  }
 0x451   : > { %v2048_v52 = vpop.f32.mrf.mxu3 }
 0x452   : > { %v2214_v12 = vrot.slane %v2048_v52, 4 }
 0x459   : > { %v2071_v53 = vpop.f32.mrf.mxu2 }
 0x45a   : > { %v2226_v58 = vrot.slane %v2071_v53, 4 }
 0x462   : > { %v2094_v36 = vpop.f32.mrf.mxu3 }
 0x463   : > { %v2212_v63 = vrot.slane %v2094_v36, 4  ;;  %v2215_v60 = vsel %vm910_vm1, %v2094_v36, %v2214_v12 }
 0x464   : > { %v2223_v8 = vperm.slane %v2215_v60, %v4336_v21 }
 0x465   : > { %v2117_v29 = vpop.f32.mrf.mxu0  ;;  %v2213_v6 = vsel %vm910_vm1, %v2212_v63, %v2048_v52 }
 0x466   : > { %v2224_v56 = vrot.slane %v2117_v29, 4  ;;  %v2227_v30 = vsel %vm910_vm1, %v2117_v29, %v2226_v58  ;;  %v2219_v9 = vperm.slane %v2213_v6, %v4336_v21  ;;  %v2274_v62 = vrot.slane %v2223_v8, 4 }
 0x467   : > { %v2235_v1 = vperm.slane %v2227_v30, %v4336_v21 }
 0x468   : > { %v2225_v4 = vsel %vm910_vm1, %v2224_v56, %v2071_v53  ;;  %v2262_v61 = vrot.slane %v2219_v9, 4 }
 0x469   : > { %v2231_v7 = vperm.slane %v2225_v4, %v4336_v21  ;;  %v2163_v39 = vpop.f32.mrf.mxu2  ;;  %v2272_v59 = vrot.slane %v2235_v1, 4  ;;  %v2275_v5 = vsel %vm910_vm1, %v2235_v1, %v2274_v62 }
 0x46a   : > { %v2250_v10 = vrot.slane %v2163_v39, 4  ;;  %v2186_v15 = vpop.f32.mrf.mxu3  ;;  %v2283_v24 = vperm.slane %v2275_v5, %v4359_v57 }
 0x46b   : > { %v2260_v54 = vrot.slane %v2231_v7, 4  ;;  %v2273_v18 = vsel %vm910_vm1, %v2272_v59, %v2223_v8  ;;  %v2236_v20 = vrot.slane %v2186_v15, 4  ;;  %v2263_v23 = vsel %vm910_vm1, %v2231_v7, %v2262_v61 }
 0x46c   : > { %v2140_v13 = vpop.f32.mrf.mxu1  ;;  %v2271_v35 = vperm.slane %v2263_v23, %v4359_v57  ;;  %v2279_v0 = vperm.slane %v2273_v18, %v4359_v57  ;;  %v2322_v42 = vrot.slane %v2283_v24, 4 }
 0x46d   : > { %v2261_v14 = vsel %vm910_vm1, %v2260_v54, %v2219_v9  ;;  %v2238_v16 = vrot.slane %v2140_v13, 4  ;;  %v2209_v17 = vpop.f32.mrf.mxu0  ;;  %v2237_v51 = vsel %vm910_vm1, %v2236_v20, %v2140_v13 }
 0x46e   : > { %v2248_v22 = vrot.slane %v2209_v17, 4  ;;  %v2251_v26 = vsel %vm910_vm1, %v2209_v17, %v2250_v10  ;;  %v2267_v28 = vperm.slane %v2261_v14, %v4359_v57  ;;  %v2243_v33 = vperm.slane %v2237_v51, %v4336_v21 }
 0x46f   : > { %v2239_v25 = vsel %vm910_vm1, %v2186_v15, %v2238_v16  ;;  %v2259_v34 = vperm.slane %v2251_v26, %v4336_v21  ;;  %v2314_v46 = vrot.slane %v2271_v35, 4  ;;  %v2318_v19 = vrot.slane %v2279_v0, 4 }
 0x470   : > { %v2247_v27 = vperm.slane %v2239_v25, %v4336_v21  ;;  %v2249_v3 = vsel %vm910_vm1, %v2248_v22, %v2163_v39  ;;  %v2286_v38 = vrot.slane %v2243_v33, 4  ;;  %v2310_v41 = vrot.slane %v2267_v28, 4 }
 0x471   : > { %v2255_v11 = vperm.slane %v2249_v3, %v4336_v21  ;;  %v2296_v50 = vrot.slane %v2259_v34, 4 }
 0x472   : > { %v2298_v37 = vrot.slane %v2247_v27, 4 }
 0x473   : > { %v2284_v40 = vrot.slane %v2255_v11, 4  ;;  %v2287_v43 = vsel %vm910_vm1, %v2255_v11, %v2286_v38  ;;  %v2297_v45 = vsel %vm910_vm1, %v2296_v50, %v2247_v27 }
 0x474   : > { %v2299_v31 = vsel %vm910_vm1, %v2259_v34, %v2298_v37  ;;  %v2295_v48 = vperm.slane %v2287_v43, %v4359_v57  ;;  %v2303_v49 = vperm.slane %v2297_v45, %v4359_v57 }
 0x475   : > { %v2285_v32 = vsel %vm910_vm1, %v2284_v40, %v2243_v33  ;;  %v2307_v44 = vperm.slane %v2299_v31, %v4359_v57 }
 0x476   : > { %v2291_v47 = vperm.slane %v2285_v32, %v4359_v57  ;;  %v2312_v12 = vrot.slane %v2295_v48, 4  ;;  %v2315_v29 = vsel %vm910_vm1, %v2295_v48, %v2314_v46  ;;  %v2316_v36 = vrot.slane %v2303_v49, 4 }
 0x477   : > { %v2320_v2 = vrot.slane %v2307_v44, 4  ;;  %v2323_v52 = vsel %vm910_vm1, %v2307_v44, %v2322_v42  ;;  %v2319_v56 = vsel %vm910_vm1, %v2303_v49, %v2318_v19  ;;  %v2336_v63 = vrot.slane %v2315_v29, 4 }
 0x478   : > { %v2308_v53 = vrot.slane %v2291_v47, 4  ;;  %v2311_v58 = vsel %vm910_vm1, %v2291_v47, %v2310_v41  ;;  %v2313_v60 = vsel %vm910_vm1, %v2312_v12, %v2271_v35  ;;  %v2360_v4 = vrot.slane %v2323_v52, 4 }
 0x479   : > { %v2321_v30 = vsel %vm910_vm1, %v2320_v2, %v2283_v24  ;;  %v2338_v1 = vrot.slane %v2311_v58, 4  ;;  %v2324_v6 = vrot.slane %v2313_v60, 4  ;;  %v2362_v7 = vrot.slane %v2319_v56, 4 }
 0x47a   : > { %v2348_v8 = vrot.slane %v2321_v30, 4  ;;  %v2309_v9 = vsel %vm910_vm1, %v2308_v53, %v2267_v28  ;;  %v2317_v62 = vsel %vm910_vm1, %v2316_v36, %v2279_v0  ;;  %v2337_v39 = vsel %vm910_vm1, %v2336_v63, %v2311_v58 }
 0x47b   : > { %v2350_v59 = vrot.slane %v2317_v62, 4  ;;  %v2361_v61 = vsel %vm910_vm1, %v2360_v4, %v2319_v56  ;;  %v2363_v10 = vsel %vm910_vm1, %v2323_v52, %v2362_v7  ;;  %v2325_v5 = vsel %vm910_vm1, %v2324_v6, %v2309_v9  ;;  %v2490_v6 = vld [vmem:[#allocation12 + $0x70] sm:$0xff]  ;;  %v2489_v7 = vld [vmem:[#allocation12 + $0x68] sm:$0xff] }
 0x47c   : > { %v2349_v54 = vsel %vm910_vm1, %v2348_v8, %v2317_v62  ;;  %v2343_v13 = vperm.slane %v2337_v39, %v4336_v21  ;;  %v2331_v15 = vperm.slane %v2325_v5, %v4336_v21  ;;  %v2367_v16 = vperm.slane %v2361_v61, %v4336_v21  ;;  %v2487_v62 = vld [vmem:[#allocation12 + $0x58] sm:$0xff]  ;;  %v2486_v39 = vld [vmem:[#allocation12 + $0x50] sm:$0xff]  ;;  %v2481_v5 = vld [vmem:[#allocation12 + $0x28] sm:$0xff] }
 0x47d   : > { %v2355_v14 = vperm.slane %v2349_v54, %v4336_v21  ;;  %v2326_v17 = vrot.slane %v2309_v9, 4  ;;  %v2339_v18 = vsel %vm910_vm1, %v2315_v29, %v2338_v1  ;;  %v2351_v24 = vsel %vm910_vm1, %v2321_v30, %v2350_v59  ;;  %v2488_v9 = vld [vmem:[#allocation12 + $0x60] sm:$0xff]  ;;  %v2485_v54 = vld [vmem:[#allocation12 + $0x48] sm:$0xff]  ;;  %v2483_v61 = vld [vmem:[#allocation12 + $0x38] sm:$0xff] }
 0x47e   : > { %v2372_v20 = vrot.slane %v2343_v13, 4  ;;  %v2347_v23 = vperm.slane %v2339_v18, %v4336_v21  ;;  %v2396_v25 = vrot.slane %v2367_v16, 4  ;;  %v2374_v26 = vrot.slane %v2331_v15, 4  ;;  %v2484_v59 = vld [vmem:[#allocation12 + $0x40] sm:$0xff] }
 0x47f   : > { %v2398_v22 = vrot.slane %v2355_v14, 4  ;;  %v2327_v28 = vsel %vm910_vm1, %v2313_v60, %v2326_v17  ;;  %v2359_v51 = vperm.slane %v2351_v24, %v4336_v21  ;;  %v2371_v11 = vperm.slane %v2363_v10, %v4336_v21  ;;  %v2482_v10 = vld [vmem:[#allocation12 + $0x30] sm:$0xff]  ;;  %v2476_v17 = vld [vmem:[#allocation12] sm:$0xff] }
 0x480   : > { %v2373_v27 = vsel %vm910_vm1, %v2372_v20, %v2331_v15  ;;  %v2335_v33 = vperm.slane %v2327_v28, %v4336_v21  ;;  %v2397_v35 = vsel %vm910_vm1, %v2396_v25, %v2355_v14  ;;  %v2375_v37 = vsel %vm910_vm1, %v2343_v13, %v2374_v26  ;;  %v2480_v13 = vld [vmem:[#allocation12 + $0x20] sm:$0xff]  ;;  %v2479_v14 = vld [vmem:[#allocation12 + $0x18] sm:$0xff]  ;;  %v2478_v15 = vld [vmem:[#allocation12 + $0x10] sm:$0xff] }
 0x481   : > { %v2399_v3 = vsel %vm910_vm1, %v2367_v16, %v2398_v22  ;;  %v2379_v34 = vperm.slane %v2373_v27, %v4359_v57  ;;  %v2403_v38 = vperm.slane %v2397_v35, %v4359_v57  ;;  %v2383_v40 = vperm.slane %v2375_v37, %v4359_v57  ;;  %v2477_v16 = vld [vmem:[#allocation12 + $0x8] sm:$0xff]  ;;  %v3566_v35 = vld [vmem:[%s4977_s6] ss:$0 sm:$0xff] }
 0x482   : > { %v2407_v0 = vperm.slane %v2399_v3, %v4359_v57  ;;  %v2384_v50 = vrot.slane %v2347_v23, 4  ;;  %v2408_v41 = vrot.slane %v2371_v11, 4  ;;  %v2386_v32 = vrot.slane %v2335_v33, 4 }
 0x483   : > { %v2422_v42 = vrot.slane %v2379_v34, 4  ;;  %v2410_v43 = vrot.slane %v2359_v51, 4  ;;  %v2420_v45 = vrot.slane %v2403_v38, 4  ;;  %v2426_v21 = vrot.slane %v2383_v40, 4 }
 0x484   : > { %v2424_v31 = vrot.slane %v2407_v0, 4  ;;  %v2385_v44 = vsel %vm910_vm1, %v2384_v50, %v2335_v33  ;;  %v2409_v46 = vsel %vm910_vm1, %v2408_v41, %v2359_v51  ;;  %v2387_v52 = vsel %vm910_vm1, %v2347_v23, %v2386_v32 }
 0x485   : > { %v2423_v47 = vsel %vm910_vm1, %v2403_v38, %v2422_v42  ;;  %v2391_v49 = vperm.slane %v2385_v44, %v4359_v57  ;;  %v2415_v19 = vperm.slane %v2409_v46, %v4359_v57  ;;  %v2427_v2 = vsel %vm910_vm1, %v2407_v0, %v2426_v21 }
 0x486   : > { %v2425_v48 = vsel %vm910_vm1, %v2424_v31, %v2383_v40  ;;  %2437 = vrot.lane.b32.xlu2 %v2423_v47, %s3992_s24  ;;  %v2411_v53 = vsel %vm910_vm1, %v2371_v11, %v2410_v43  ;;  %2445 = vrot.lane.b32.xlu0 %v2427_v2, %s3989_s9  ;;  %v2421_v12 = vsel %vm910_vm1, %v2420_v45, %v2379_v34  ;;  %v3995_v40 = vmov 128.0  }
 0x487   : > { %2441 = vrot.lane.b32.xlu1 %v2425_v48, %s3991_s29  ;;  %v2419_v58 = vperm.slane %v2411_v53, %v4359_v57  ;;  %v2428_v29 = vrot.slane %v2415_v19, 4  ;;  %v2395_v36 = vperm.slane %v2387_v52, %v4359_v57  ;;  %v2430_v30 = vrot.slane %v2391_v49, 4  ;;  %v2491_v57 = vld [vmem:[#allocation12 + $0x78] sm:$0xff] }
 0x488   : > { %2496 = vmatpush.msra.mxu1 %v2491_v57  ;;  %3601 = vrcp.f32 %v3995_v40  ;;  %v3996_v47 = vmov 0.0  }
 0x489   : > { %v2432_v56 = vrot.slane %v2419_v58, 4  ;;  %v2429_v63 = vsel %vm910_vm1, %v2428_v29, %v2391_v49  ;;  %v2431_v1 = vsel %vm910_vm1, %v2415_v19, %v2430_v30  ;;  %v2434_v8 = vrot.slane %v2395_v36, 4  ;;  %2555 = vst [vmem:[#allocation3] sm:$0xff] %v3996_v47  ;;  %v3567_v29 = vld [vmem:[%s5027_s19] ss:$0 sm:$0xff] }
 0x48a   : > { %2497 = vmatpush.msra.mxu1 %v2490_v6 }
 0x48b   : > { %v2433_v60 = vsel %vm910_vm1, %v2432_v56, %v2395_v36  ;;  %v2435_v4 = vsel %vm910_vm1, %v2419_v58, %v2434_v8  ;;  %vm2466_vm1 = vcmask 392192   ;;  %v3568_v56 = vld [vmem:[%s5028_s17] ss:$0 sm:$0xff] }
 0x48c   : > { %2498 = vmatpush.msra.mxu1 %v2489_v7 }
 0x48e   : > { %2449 = vrot.lane.b32.xlu2 %v2429_v63, %s3986_s15  ;;  %2453 = vrot.lane.b32.xlu0 %v2431_v1, %s3990_s8  ;;  %v3602_v50 = vpop.eup %3601 }
 0x48f   : > { %2457 = vrot.lane.b32.xlu1 %v2433_v60, %s3987_s1  ;;  %2499 = vmatpush.msra.mxu1 %v2488_v9  ;;  %v2522_v41 = vmul.f32 128.0, %v3602_v50 }
 0x491   : > { %2500 = vmatpush.msra.mxu1 %v2487_v62  ;;  %v2523_v42 = vsub.f32 1.0, %v2522_v41 }
 0x493   : > { %2501 = vmatpush.msra.mxu1 %v2486_v39  ;;  %v2524_v31 = vmul.f32 %v3602_v50, %v2523_v42 }
 0x495   : > { %2502 = vmatpush.msra.mxu1 %v2485_v54  ;;  %v2525_v32 = vadd.f32 %v3602_v50, %v2524_v31 }
 0x496   : > { %2461 = vrot.lane.b32.xlu2 %v2435_v4, %s3988_s28 }
 0x497   : > { %2503 = vmatpush.msra.mxu1 %v2484_v59 }
 0x499   : > { %2504 = vmatpush.msra.mxu1 %v2483_v61 }
 0x49b   : > { %2505 = vmatpush.msra.mxu1 %v2482_v10 }
 0x49d   : > { %2506 = vmatpush.msra.mxu1 %v2481_v5 }
 0x49f   : > { %2507 = vmatpush.msra.mxu1 %v2480_v13 }
 0x4a1   : > { %2508 = vmatpush.msra.mxu1 %v2479_v14 }
 0x4a3   : > { %2509 = vmatpush.msra.mxu1 %v2478_v15 }
 0x4a5   : > { %2510 = vmatpush.msra.mxu1 %v2477_v16 }
 0x4a7   : > { %2511 = vmatpush.msra.mxu1 %v2476_v17 }
 0x4e0   : > { %v2438_v18 = vpop.permute.xlu2 %2437 }
 0x4e1   : > { %v2464_v24 = vsel %vm1626_vm2, %v2421_v12, %v2438_v18 }
 0x4e8   : > { %v2450_v22 = vpop.permute.xlu2 %2449 }
 0x4f0   : > { %v2462_v33 = vpop.permute.xlu2 %2461 }
 0x4f8   : > { %v2446_v23 = vpop.permute.xlu0 %2445 }
 0x4f9   : > { %v2442_v20 = vpop.permute.xlu1 %2441 }
 0x4fa   : > { %v2465_v25 = vsel %vm746_vm0, %v2464_v24, %v2442_v20  ;;  %vm2526_vm0 = vweird.f32 %v3602_v50 }
 0x4fb   : > { %v2467_v26 = vsel %vm2466_vm1, %v2465_v25, %v2446_v23  ;;  %v2527_v43 = vsel %vm2526_vm0, %v3602_v50, %v2525_v32 }
 0x4fc   : > { %v2469_v27 = vsel %vm2468_vm3, %v2467_v26, %v2450_v22 }
 0x500   : > { %v2454_v51 = vpop.permute.xlu0 %2453 }
 0x501   : > { %v2458_v28 = vpop.permute.xlu1 %2457  ;;  %v2471_v3 = vsel %vm2470_vm12, %v2469_v27, %v2454_v51 }
 0x502   : > { %v2473_v11 = vsel %vm2472_vm13, %v2471_v3, %v2458_v28 }
 0x503   : > { %v2475_v34 = vsel %vm2474_vm14, %v2473_v11, %v2462_v33 }
 0x504   : > { %2512 = vmatmul.f32.vlgmr.msra.gmra.mxu1 %v2475_v34 }
 0x581   : > { %v2513_v37 = vpop.f32.mrf.mxu1 }
 0x582   : > { %v2514_v0 = vadd.f32 %v3566_v35, %v2513_v37 }
 0x584   : > { %v2516_v38 = vadd.f32 %v2514_v0, %v4301_v55 }
 0x586   : > { %2519 = vadd.xlane.f32.xlu0 %v2516_v38 }
 0x5f9   : > { %v2520_v45 = vpop.xlane.xlu0 %2519 }
 0x5fa   : > { %v2528_v21 = vmul.f32 %v2527_v43, %v2520_v45 }
 0x5fc   : > { %v2529_v44 = vsub.f32 %v2516_v38, %v2528_v21 }
 0x5fe   : > { %v2530_v46 = vmul.f32 %v2529_v44, %v2529_v44 }
 0x600   : > { %2531 = vadd.xlane.f32.xlu1 %v2530_v46 }
 0x673   : > { %v2532_v48 = vpop.xlane.xlu1 %2531 }
 0x674   : > { %v2533_v49 = vmul.f32 %v2532_v48, %v2527_v43 }
 0x676   : > { %v2534_v55 = vadd.f32 1e-05, %v2533_v49 }
 0x678   : > { %3603 = vrsqrt.f32 %v2534_v55  ;;  %vm2541_vm15 = vweird.f32 %v2534_v55 }
 0x67e   : > { %v3604_v19 = vpop.eup %3603 }
 0x67f   : > { %v2536_v2 = vmul.f32 %v3604_v19, %v2534_v55  ;;  %vm2542_vm2 = vweird.f32 %v3604_v19 }
 0x680   : > { %vm2543_vm4 = vmor %vm2541_vm15, %vm2542_vm2 }
 0x681   : > { %v2537_v52 = vmul.f32 %v3604_v19, %v2536_v2 }
 0x683   : > { %v2538_v53 = vmul.f32 0.5, %v2537_v52 }
 0x685   : > { %v2539_v58 = vsub.f32 1.5, %v2538_v53 }
 0x687   : > { %v2540_v12 = vmul.f32 %v3604_v19, %v2539_v58 }
 0x689   : > { %v2544_v36 = vsel %vm2543_vm4, %v3604_v19, %v2540_v12 }
 0x68a   : > { %v2545_v30 = vmul.f32 %v2544_v36, %v2529_v44 }
 0x68c   : > { %v2549_v63 = vmul.f32 %v3567_v29, %v2545_v30 }
 0x68e   : > { %v2553_v60 = vadd.f32 %v3568_v56, %v2549_v63 }
 0x690   : > { %2554 = vst [vmem:[#allocation2] sm:$0xff] %v2553_v60 }
 0x691 PF: > { %v2588_v1 = vld [vmem:[%s4279_s21 + $0xf8] sm:$0xff]  ;;  %v2586_v8 = vld [vmem:[%s4279_s21 + $0xe8] sm:$0xff]  ;;  %v2587_v9 = vld [vmem:[%s4279_s21 + $0xf0] sm:$0xff]  ;;  %p3261_p1 = scmp.ne.s32.totalorder %s4113_s18, 3 }
 0x692   : > { %v2584_v4 = vld [vmem:[%s4279_s21 + $0xd8] sm:$0xff]  ;;  %v2651_v57 = vunpack.c.l.bf16 %v2588_v1  ;;  %v2647_v6 = vunpack.c.l.bf16 %v2586_v8  ;;  %v2652_v7 = vunpack.c.h.bf16 %v2588_v1  ;;  %v2648_v62 = vunpack.c.h.bf16 %v2586_v8  ;;  %v2582_v39 = vld [vmem:[%s4279_s21 + $0xc8] sm:$0xff]  ;;  %v2585_v54 = vld [vmem:[%s4279_s21 + $0xe0] sm:$0xff]  ;;  %s5030_s16 = sld [smem:[#allocation36_spill]] (!%p3261_p1) }
 0x693   : > { %v2643_v59 = vunpack.c.l.bf16 %v2584_v4  ;;  %v2644_v61 = vunpack.c.h.bf16 %v2584_v4  ;;  %v2649_v10 = vunpack.c.l.bf16 %v2587_v9  ;;  %v2650_v5 = vunpack.c.h.bf16 %v2587_v9  ;;  %v2583_v13 = vld [vmem:[%s4279_s21 + $0xd0] sm:$0xff]  ;;  %v2580_v14 = vld [vmem:[%s4279_s21 + $0xb8] sm:$0xff]  ;;  %v2581_v20 = vld [vmem:[%s4279_s21 + $0xc0] sm:$0xff]  ;;  %s5031_s1 = sld [smem:[#allocation37_spill]] (!%p3261_p1) }
 0x694   : > { %2703 = vmatpush.msra.mxu2 %v2651_v57  ;;  %2723 = vmatpush.msra.mxu3 %v2652_v7  ;;  %v2645_v15 = vunpack.c.l.bf16 %v2585_v54  ;;  %v2646_v16 = vunpack.c.h.bf16 %v2585_v54  ;;  %v2639_v17 = vunpack.c.l.bf16 %v2582_v39  ;;  %v2640_v18 = vunpack.c.h.bf16 %v2582_v39  ;;  %v2578_v22 = vld [vmem:[%s4279_s21 + $0xa8] sm:$0xff]  ;;  %v2579_v28 = vld [vmem:[%s4279_s21 + $0xb0] sm:$0xff]  ;;  %v2576_v51 = vld [vmem:[%s4279_s21 + $0x98] sm:$0xff]  ;;  %s5032_s8 = sld [smem:[#allocation39_spill]] (!%p3261_p1) }
 0x695   : > { %2663 = vmatpush.msra.mxu0 %v2649_v10  ;;  %2683 = vmatpush.msra.mxu1 %v2650_v5  ;;  %v2641_v23 = vunpack.c.l.bf16 %v2583_v13  ;;  %v2642_v24 = vunpack.c.h.bf16 %v2583_v13  ;;  %v2635_v25 = vunpack.c.l.bf16 %v2580_v14  ;;  %v2636_v26 = vunpack.c.h.bf16 %v2580_v14  ;;  %v2577_v34 = vld [vmem:[%s4279_s21 + $0xa0] sm:$0xff]  ;;  %v2574_v35 = vld [vmem:[%s4279_s21 + $0x88] sm:$0xff]  ;;  %v2575_v50 = vld [vmem:[%s4279_s21 + $0x90] sm:$0xff] }
 0x696   : > { %2704 = vmatpush.msra.mxu2 %v2647_v6  ;;  %2724 = vmatpush.msra.mxu3 %v2648_v62  ;;  %v2637_v27 = vunpack.c.l.bf16 %v2581_v20  ;;  %v2638_v3 = vunpack.c.h.bf16 %v2581_v20  ;;  %v2631_v33 = vunpack.c.l.bf16 %v2578_v22  ;;  %v2632_v11 = vunpack.c.h.bf16 %v2578_v22  ;;  %v2572_v41 = vld [vmem:[%s4279_s21 + $0x78] sm:$0xff]  ;;  %v2573_v45 = vld [vmem:[%s4279_s21 + $0x80] sm:$0xff]  ;;  %v2570_v21 = vld [vmem:[%s4279_s21 + $0x68] sm:$0xff] }
 0x697   : > { %2664 = vmatpush.msra.mxu0 %v2645_v15  ;;  %2684 = vmatpush.msra.mxu1 %v2646_v16  ;;  %v2633_v37 = vunpack.c.l.bf16 %v2579_v28  ;;  %v2634_v0 = vunpack.c.h.bf16 %v2579_v28  ;;  %v2627_v38 = vunpack.c.l.bf16 %v2576_v51  ;;  %v2628_v40 = vunpack.c.h.bf16 %v2576_v51  ;;  %v2571_v49 = vld [vmem:[%s4279_s21 + $0x70] sm:$0xff]  ;;  %v2568_v55 = vld [vmem:[%s4279_s21 + $0x58] sm:$0xff]  ;;  %v2569_v58 = vld [vmem:[%s4279_s21 + $0x60] sm:$0xff] }
 0x698   : > { %2705 = vmatpush.msra.mxu2 %v2643_v59  ;;  %2725 = vmatpush.msra.mxu3 %v2644_v61  ;;  %v2629_v42 = vunpack.c.l.bf16 %v2577_v34  ;;  %v2630_v31 = vunpack.c.h.bf16 %v2577_v34  ;;  %v2623_v32 = vunpack.c.l.bf16 %v2574_v35  ;;  %v2624_v43 = vunpack.c.h.bf16 %v2574_v35  ;;  %v2566_v12 = vld [vmem:[%s4279_s21 + $0x48] sm:$0xff]  ;;  %v2567_v63 = vld [vmem:[%s4279_s21 + $0x50] sm:$0xff]  ;;  %v2564_v60 = vld [vmem:[%s4279_s21 + $0x38] sm:$0xff] }
 0x699   : > { %2665 = vmatpush.msra.mxu0 %v2641_v23  ;;  %2685 = vmatpush.msra.mxu1 %v2642_v24  ;;  %v2625_v44 = vunpack.c.l.bf16 %v2575_v50  ;;  %v2626_v46 = vunpack.c.h.bf16 %v2575_v50  ;;  %v2619_v47 = vunpack.c.l.bf16 %v2572_v41  ;;  %v2620_v48 = vunpack.c.h.bf16 %v2572_v41  ;;  %v2565_v6 = vld [vmem:[%s4279_s21 + $0x40] sm:$0xff]  ;;  %v2562_v7 = vld [vmem:[%s4279_s21 + $0x28] sm:$0xff]  ;;  %v2563_v59 = vld [vmem:[%s4279_s21 + $0x30] sm:$0xff] }
 0x69a   : > { %2706 = vmatpush.msra.mxu2 %v2639_v17  ;;  %2726 = vmatpush.msra.mxu3 %v2640_v18  ;;  %v2621_v19 = vunpack.c.l.bf16 %v2573_v45  ;;  %v2622_v2 = vunpack.c.h.bf16 %v2573_v45  ;;  %v2615_v52 = vunpack.c.l.bf16 %v2570_v21  ;;  %v2616_v53 = vunpack.c.h.bf16 %v2570_v21  ;;  %v2560_v61 = vld [vmem:[%s4279_s21 + $0x18] sm:$0xff]  ;;  %v2561_v15 = vld [vmem:[%s4279_s21 + $0x20] sm:$0xff]  ;;  %v2558_v16 = vld [vmem:[%s4279_s21 + $0x8] sm:$0xff] }
 0x69b   : > { %2666 = vmatpush.msra.mxu0 %v2637_v27  ;;  %2686 = vmatpush.msra.mxu1 %v2638_v3  ;;  %v2617_v29 = vunpack.c.l.bf16 %v2571_v49  ;;  %v2618_v36 = vunpack.c.h.bf16 %v2571_v49  ;;  %v2611_v56 = vunpack.c.l.bf16 %v2568_v55  ;;  %v2612_v30 = vunpack.c.h.bf16 %v2568_v55  ;;  %v3418_v51 = vld [vmem:[%s4288_s7 + $0xb8] sm:$0xff]   ;;  %v3417_v41 = vld [vmem:[%s4288_s7 + $0xb0] sm:$0xff]   ;;  %v3416_v55 = vld [vmem:[%s4288_s7 + $0xa8] sm:$0xff]  }
 0x69c   : > { %2707 = vmatpush.msra.mxu2 %v2635_v25  ;;  %2727 = vmatpush.msra.mxu3 %v2636_v26  ;;  %v2613_v1 = vunpack.c.l.bf16 %v2569_v58  ;;  %v2614_v8 = vunpack.c.h.bf16 %v2569_v58  ;;  %v2607_v4 = vunpack.c.l.bf16 %v2566_v12  ;;  %v2608_v57 = vunpack.c.h.bf16 %v2566_v12  ;;  %v2559_v25 = vld [vmem:[%s4279_s21 + $0x10] sm:$0xff]  ;;  %v3426_v27 = vld [vmem:[%s4288_s7 + $0xf8] sm:$0xff]   ;;  %v3401_v21 = vld [vmem:[%s4288_s7 + $0x30] sm:$0xff]  }
 0x69d   : > { %2667 = vmatpush.msra.mxu0 %v2633_v37  ;;  %2687 = vmatpush.msra.mxu1 %v2634_v0  ;;  %v2609_v9 = vunpack.c.l.bf16 %v2567_v63  ;;  %v2610_v62 = vunpack.c.h.bf16 %v2567_v63  ;;  %v2603_v39 = vunpack.c.l.bf16 %v2564_v60  ;;  %v2604_v54 = vunpack.c.h.bf16 %v2564_v60  ;;  %v2557_v3 = vld [vmem:[%s4279_s21] sm:$0xff]  ;;  %v3400_v12 = vld [vmem:[%s4288_s7 + $0x28] sm:$0xff]   ;;  %v3415_v60 = vld [vmem:[%s4288_s7 + $0xa0] sm:$0xff]  }
 0x69e   : > { %2708 = vmatpush.msra.mxu2 %v2631_v33  ;;  %2728 = vmatpush.msra.mxu3 %v2632_v11  ;;  %v2605_v10 = vunpack.c.l.bf16 %v2565_v6  ;;  %v2606_v5 = vunpack.c.h.bf16 %v2565_v6  ;;  %v2599_v13 = vunpack.c.l.bf16 %v2562_v7  ;;  %v2600_v14 = vunpack.c.h.bf16 %v2562_v7  ;;  %v4902_v33 = vld [vmem:[#allocation2] sm:$0xff] }
 0x69f   : > { %2668 = vmatpush.msra.mxu0 %v2629_v42  ;;  %2688 = vmatpush.msra.mxu1 %v2630_v31  ;;  %v2601_v17 = vunpack.c.l.bf16 %v2563_v59  ;;  %v2602_v18 = vunpack.c.h.bf16 %v2563_v59  ;;  %v2595_v20 = vunpack.c.l.bf16 %v2560_v61  ;;  %v2596_v22 = vunpack.c.h.bf16 %v2560_v61  ;;  %v3402_v0 = vld [vmem:[%s4288_s7 + $0x38] sm:$0xff]   ;;  %v3399_v7 = vld [vmem:[%s4288_s7 + $0x20] sm:$0xff]  }
 0x6a0   : > { %2709 = vmatpush.msra.mxu2 %v2627_v38  ;;  %2729 = vmatpush.msra.mxu3 %v2628_v40  ;;  %v2597_v23 = vunpack.c.l.bf16 %v2561_v15  ;;  %v2598_v24 = vunpack.c.h.bf16 %v2561_v15  ;;  %v2591_v26 = vunpack.c.l.bf16 %v2558_v16  ;;  %v2592_v28 = vunpack.c.h.bf16 %v2558_v16  ;;  %v3410_v50 = vld [vmem:[%s4288_s7 + $0x78] sm:$0xff]  }
 0x6a1   : > { %2669 = vmatpush.msra.mxu0 %v2625_v44  ;;  %2689 = vmatpush.msra.mxu1 %v2626_v46  ;;  %v2593_v11 = vunpack.c.l.bf16 %v2559_v25  ;;  %v2594_v34 = vunpack.c.h.bf16 %v2559_v25  ;;  %v3363_v35 = vunpack.c.h.bf16 %v3418_v51  ;;  %v3395_v37 = vunpack.c.h.bf16 %v3426_v27  ;;  %v3414_v61 = vld [vmem:[%s4288_s7 + $0x98] sm:$0xff]  }
 0x6a2   : > { %2710 = vmatpush.msra.mxu2 %v2623_v32  ;;  %2730 = vmatpush.msra.mxu3 %v2624_v43  ;;  %v2589_v38 = vunpack.c.l.bf16 %v2557_v3  ;;  %v2590_v40 = vunpack.c.h.bf16 %v2557_v3  ;;  %v3362_v42 = vunpack.c.l.bf16 %v3418_v51  ;;  %v3299_v31 = vunpack.c.h.bf16 %v3402_v0  ;;  %v3425_v32 = vld [vmem:[%s4288_s7 + $0xf0] sm:$0xff]   ;;  %v3398_v16 = vld [vmem:[%s4288_s7 + $0x18] sm:$0xff]  }
 0x6a3   : > { %2670 = vmatpush.msra.mxu0 %v2621_v19  ;;  %2690 = vmatpush.msra.mxu1 %v2622_v2  ;;  %v3331_v43 = vunpack.c.h.bf16 %v3410_v50  ;;  %v3394_v45 = vunpack.c.l.bf16 %v3426_v27  ;;  %v3359_v44 = vunpack.c.h.bf16 %v3417_v41  ;;  %v3298_v46 = vunpack.c.l.bf16 %v3402_v0  ;;  %v3397_v3 = vld [vmem:[%s4288_s7 + $0x10] sm:$0xff]  }
 0x6a4   : > { %2711 = vmatpush.msra.mxu2 %v2619_v47  ;;  %2731 = vmatpush.msra.mxu3 %v2620_v48  ;;  %v3409_v47 = vld [vmem:[%s4288_s7 + $0x70] sm:$0xff]   ;;  %v3330_v48 = vunpack.c.l.bf16 %v3410_v50  ;;  %v3391_v49 = vunpack.c.h.bf16 %v3425_v32  ;;  %v3358_v19 = vunpack.c.l.bf16 %v3417_v41  ;;  %v3295_v2 = vunpack.c.h.bf16 %v3401_v21 }
 0x6a5   : > { %2671 = vmatpush.msra.mxu0 %v2617_v29  ;;  %2691 = vmatpush.msra.mxu1 %v2618_v36  ;;  %v3390_v58 = vunpack.c.l.bf16 %v3425_v32  ;;  %v3355_v29 = vunpack.c.h.bf16 %v3416_v55  ;;  %v3294_v36 = vunpack.c.l.bf16 %v3401_v21  ;;  %v3346_v25 = vunpack.c.l.bf16 %v3414_v61  ;;  %v3420_v32 = vld [vmem:[%s4288_s7 + $0xc8] sm:$0xff]  }
 0x6a6   : > { %2712 = vmatpush.msra.mxu2 %v2615_v52  ;;  %2732 = vmatpush.msra.mxu3 %v2616_v53  ;;  %v3424_v52 = vld [vmem:[%s4288_s7 + $0xe8] sm:$0xff]   ;;  %v3327_v53 = vunpack.c.h.bf16 %v3409_v47  ;;  %v3279_v50 = vunpack.c.h.bf16 %v3397_v3 }
 0x6a7   : > { %2672 = vmatpush.msra.mxu0 %v2613_v1  ;;  %2692 = vmatpush.msra.mxu1 %v2614_v8  ;;  %v3387_v63 = vunpack.c.h.bf16 %v3424_v52  ;;  %v3354_v1 = vunpack.c.l.bf16 %v3416_v55  ;;  %v3291_v8 = vunpack.c.h.bf16 %v3400_v12  ;;  %v3386_v6 = vunpack.c.l.bf16 %v3424_v52  ;;  %v3419_v52 = vld [vmem:[%s4288_s7 + $0xc0] sm:$0xff]  }
 0x6a8   : > { %2713 = vmatpush.msra.mxu2 %v2611_v56  ;;  %2733 = vmatpush.msra.mxu3 %v2612_v30  ;;  %v3408_v56 = vld [vmem:[%s4288_s7 + $0x68] sm:$0xff]   ;;  %v3326_v30 = vunpack.c.l.bf16 %v3409_v47 }
 0x6a9   : > { %2673 = vmatpush.msra.mxu0 %v2609_v9  ;;  %2693 = vmatpush.msra.mxu1 %v2610_v62  ;;  %v3351_v9 = vunpack.c.h.bf16 %v3415_v60  ;;  %v3290_v62 = vunpack.c.l.bf16 %v3400_v12  ;;  %v3404_v47 = vld [vmem:[%s4288_s7 + $0x48] sm:$0xff]  }
 0x6aa   : > { %2714 = vmatpush.msra.mxu2 %v2607_v4  ;;  %2734 = vmatpush.msra.mxu3 %v2608_v57  ;;  %v3423_v4 = vld [vmem:[%s4288_s7 + $0xe0] sm:$0xff]   ;;  %v3323_v57 = vunpack.c.h.bf16 %v3408_v56  ;;  %v3307_v55 = vunpack.c.h.bf16 %v3404_v47 }
 0x6ab   : > { %2674 = vmatpush.msra.mxu0 %v2605_v10  ;;  %2694 = vmatpush.msra.mxu1 %v2606_v5  ;;  %v3383_v59 = vunpack.c.h.bf16 %v3423_v4  ;;  %v3350_v10 = vunpack.c.l.bf16 %v3415_v60  ;;  %v3287_v5 = vunpack.c.h.bf16 %v3399_v7  ;;  %v3382_v15 = vunpack.c.l.bf16 %v3423_v4  ;;  %v2653_v4 = vld [vmem:[%s658_s14] sm:$0xf]  ;;  %s5029_s14 = sld [smem:[#allocation35_spill]] (!%p3261_p1) }
 0x6ac   : > { %2715 = vmatpush.msra.mxu2 %v2603_v39  ;;  %2735 = vmatpush.msra.mxu3 %v2604_v54  ;;  %v3407_v39 = vld [vmem:[%s4288_s7 + $0x60] sm:$0xff]   ;;  %v3322_v54 = vunpack.c.l.bf16 %v3408_v56  ;;  %v3366_v60 = vunpack.c.l.bf16 %v3419_v52 }
 0x6ad   : > { %2675 = vmatpush.msra.mxu0 %v2601_v17  ;;  %2695 = vmatpush.msra.mxu1 %v2602_v18  ;;  %v3347_v17 = vunpack.c.h.bf16 %v3414_v61  ;;  %v3286_v18 = vunpack.c.l.bf16 %v3399_v7  ;;  %v3403_v56 = vld [vmem:[%s4288_s7 + $0x40] sm:$0xff]   ;;  %v2657_v7 = vperm.slane %v2653_v4, 2 }
 0x6ae   : > { %2716 = vmatpush.msra.mxu2 %v2599_v13  ;;  %2736 = vmatpush.msra.mxu3 %v2600_v14  ;;  %v3422_v13 = vld [vmem:[%s4288_s7 + $0xd8] sm:$0xff]   ;;  %v3319_v14 = vunpack.c.h.bf16 %v3407_v39 }
 0x6af   : > { %2676 = vmatpush.msra.mxu0 %v2597_v23  ;;  %2696 = vmatpush.msra.mxu1 %v2598_v24  ;;  %v3379_v23 = vunpack.c.h.bf16 %v3422_v13  ;;  %v3413_v24 = vld [vmem:[%s4288_s7 + $0x90] sm:$0xff]   ;;  %v3378_v27 = vunpack.c.l.bf16 %v3422_v13 }
 0x6b0   : > { %2717 = vmatpush.msra.mxu2 %v2595_v20  ;;  %2737 = vmatpush.msra.mxu3 %v2596_v22  ;;  %v3406_v20 = vld [vmem:[%s4288_s7 + $0x58] sm:$0xff]   ;;  %v3318_v22 = vunpack.c.l.bf16 %v3407_v39 }
 0x6b1   : > { %2677 = vmatpush.msra.mxu0 %v2593_v11  ;;  %2697 = vmatpush.msra.mxu1 %v2594_v34  ;;  %v3315_v51 = vunpack.c.h.bf16 %v3406_v20  ;;  %v3343_v11 = vunpack.c.h.bf16 %v3413_v24  ;;  %v3282_v34 = vunpack.c.l.bf16 %v3398_v16 }
 0x6b2   : > { %2718 = vmatpush.msra.mxu2 %v2591_v26  ;;  %2738 = vmatpush.msra.mxu3 %v2592_v28  ;;  %v3283_v26 = vunpack.c.h.bf16 %v3398_v16  ;;  %v3421_v28 = vld [vmem:[%s4288_s7 + $0xd0] sm:$0xff]  }
 0x6b3   : > { %2719 = vmatmul.f32.vlgmr.msra.gmra.mxu2 %v4902_v33  ;;  %2739 = vmatmul.f32.vlgmr.msra.gmra.mxu3 %v4902_v33  ;;  %v3375_v0 = vunpack.c.h.bf16 %v3421_v28 }
 0x6b4   : > { %2916 = vmatpush.msrb.mxu2 %v3363_v35  ;;  %2936 = vmatpush.msrb.mxu3 %v3395_v37  ;;  %v3405_v35 = vld [vmem:[%s4288_s7 + $0x50] sm:$0xff]   ;;  %v3314_v37 = vunpack.c.l.bf16 %v3406_v20 }
 0x6b5   : > { %2678 = vmatpush.msra.mxu0 %v2589_v38  ;;  %2698 = vmatpush.msra.mxu1 %v2590_v40  ;;  %v3412_v38 = vld [vmem:[%s4288_s7 + $0x88] sm:$0xff]   ;;  %v3342_v40 = vunpack.c.l.bf16 %v3413_v24  ;;  %v3311_v41 = vunpack.c.h.bf16 %v3405_v35 }
 0x6b6   : > { %2679 = vmatmul.f32.vlgmr.msra.gmra.mxu0 %v4902_v33  ;;  %2699 = vmatmul.f32.vlgmr.msra.gmra.mxu1 %v4902_v33  ;;  %v3338_v21 = vunpack.c.l.bf16 %v3412_v38 }
 0x6b7   : > { %2917 = vmatpush.msrb.mxu2 %v3362_v42  ;;  %2876 = vmatpush.msrb.mxu0 %v3299_v31  ;;  %v3374_v42 = vunpack.c.l.bf16 %v3421_v28  ;;  %v3339_v31 = vunpack.c.h.bf16 %v3412_v38 }
 0x6b8   : > { %2896 = vmatpush.msrb.mxu1 %v3331_v43  ;;  %2937 = vmatpush.msrb.mxu3 %v3394_v45  ;;  %v3278_v43 = vunpack.c.l.bf16 %v3397_v3  ;;  %v3310_v45 = vunpack.c.l.bf16 %v3405_v35 }
 0x6b9   : > { %2918 = vmatpush.msrb.mxu2 %v3359_v44  ;;  %2877 = vmatpush.msrb.mxu0 %v3298_v46  ;;  %v3371_v44 = vunpack.c.h.bf16 %v3420_v32  ;;  %v3396_v46 = vld [vmem:[%s4288_s7 + $0x8] sm:$0xff]  }
 0x6ba   : > { %2897 = vmatpush.msrb.mxu1 %v3330_v48  ;;  %2938 = vmatpush.msrb.mxu3 %v3391_v49  ;;  %v3411_v48 = vld [vmem:[%s4288_s7 + $0x80] sm:$0xff]   ;;  %v3275_v49 = vunpack.c.h.bf16 %v3396_v46 }
 0x6bb   : > { %2919 = vmatpush.msrb.mxu2 %v3358_v19  ;;  %2878 = vmatpush.msrb.mxu0 %v3295_v2  ;;  %v3335_v19 = vunpack.c.h.bf16 %v3411_v48  ;;  %v3370_v2 = vunpack.c.l.bf16 %v3420_v32  ;;  %v3334_v12 = vunpack.c.l.bf16 %v3411_v48 }
 0x6bc   : > { %2898 = vmatpush.msrb.mxu1 %v3327_v53  ;;  %2939 = vmatpush.msrb.mxu3 %v3390_v58  ;;  %v3274_v53 = vunpack.c.l.bf16 %v3396_v46  ;;  %v3306_v58 = vunpack.c.l.bf16 %v3404_v47 }
 0x6bd   : > { %2920 = vmatpush.msrb.mxu2 %v3355_v29  ;;  %2879 = vmatpush.msrb.mxu0 %v3294_v36  ;;  %v3367_v29 = vunpack.c.h.bf16 %v3419_v52  ;;  %v3269_v36 = vld [vmem:[%s4288_s7] sm:$0xff]  }
 0x6be   : > { %2899 = vmatpush.msrb.mxu1 %v3326_v30  ;;  %2940 = vmatpush.msrb.mxu3 %v3387_v63  ;;  %v3271_v30 = vunpack.c.h.bf16 %v3269_v36  ;;  %v3303_v63 = vunpack.c.h.bf16 %v3403_v56 }
 0x6bf   : > { %2921 = vmatpush.msrb.mxu2 %v3354_v1  ;;  %2880 = vmatpush.msrb.mxu0 %v3291_v8  ;;  %v3270_v1 = vunpack.c.l.bf16 %v3269_v36  ;;  %v3302_v8 = vunpack.c.l.bf16 %v3403_v56 }
 0x6c0   : > { %2900 = vmatpush.msrb.mxu1 %v3323_v57  ;;  %2941 = vmatpush.msrb.mxu3 %v3386_v6  ;;  %v2655_v57 = vperm.slane %v2653_v4, 0  ;;  %v2656_v6 = vperm.slane %v2653_v4, 1 }
 0x6c1   : > { %2922 = vmatpush.msrb.mxu2 %v3351_v9  ;;  %2881 = vmatpush.msrb.mxu0 %v3290_v62  ;;  %v2658_v9 = vperm.slane %v2653_v4, 3 }
 0x6c2   : > { %2901 = vmatpush.msrb.mxu1 %v3322_v54  ;;  %2942 = vmatpush.msrb.mxu3 %v3383_v59 }
 0x6c3   : > { %2923 = vmatpush.msrb.mxu2 %v3350_v10  ;;  %2882 = vmatpush.msrb.mxu0 %v3287_v5 }
 0x6c4   : > { %2902 = vmatpush.msrb.mxu1 %v3319_v14  ;;  %2943 = vmatpush.msrb.mxu3 %v3382_v15 }
 0x6c5   : > { %2924 = vmatpush.msrb.mxu2 %v3347_v17  ;;  %2883 = vmatpush.msrb.mxu0 %v3286_v18 }
 0x6c6   : > { %2903 = vmatpush.msrb.mxu1 %v3318_v22  ;;  %2944 = vmatpush.msrb.mxu3 %v3379_v23 }
 0x6c7   : > { %2925 = vmatpush.msrb.mxu2 %v3346_v25  ;;  %2884 = vmatpush.msrb.mxu0 %v3283_v26  ;;  %v2747_v26 = vld [vmem:[#allocation3] sm:$0xff] }
 0x6c8   : > { %2904 = vmatpush.msrb.mxu1 %v3315_v51  ;;  %2945 = vmatpush.msrb.mxu3 %v3378_v27 }
 0x6c9   : > { %2926 = vmatpush.msrb.mxu2 %v3343_v11  ;;  %2885 = vmatpush.msrb.mxu0 %v3282_v34 }
 0x6ca   : > { %2905 = vmatpush.msrb.mxu1 %v3314_v37  ;;  %2946 = vmatpush.msrb.mxu3 %v3375_v0 }
 0x6cb   : > { %2927 = vmatpush.msrb.mxu2 %v3342_v40  ;;  %2886 = vmatpush.msrb.mxu0 %v3279_v50 }
 0x6cc   : > { %2906 = vmatpush.msrb.mxu1 %v3311_v41  ;;  %2947 = vmatpush.msrb.mxu3 %v3374_v42 }
 0x6cd   : > { %2928 = vmatpush.msrb.mxu2 %v3339_v31  ;;  %2887 = vmatpush.msrb.mxu0 %v3278_v43 }
 0x6ce   : > { %2907 = vmatpush.msrb.mxu1 %v3310_v45  ;;  %2948 = vmatpush.msrb.mxu3 %v3371_v44 }
 0x6cf   : > { %2929 = vmatpush.msrb.mxu2 %v3338_v21  ;;  %2888 = vmatpush.msrb.mxu0 %v3275_v49 }
 0x6d0   : > { %2908 = vmatpush.msrb.mxu1 %v3307_v55  ;;  %2949 = vmatpush.msrb.mxu3 %v3370_v2 }
 0x6d1   : > { %2930 = vmatpush.msrb.mxu2 %v3335_v19  ;;  %2889 = vmatpush.msrb.mxu0 %v3274_v53 }
 0x6d2   : > { %2909 = vmatpush.msrb.mxu1 %v3306_v58  ;;  %2950 = vmatpush.msrb.mxu3 %v3367_v29 }
 0x6d3   : > { %2931 = vmatpush.msrb.mxu2 %v3334_v12  ;;  %2890 = vmatpush.msrb.mxu0 %v3271_v30 }
 0x6d4   : > { %2910 = vmatpush.msrb.mxu1 %v3303_v63  ;;  %2951 = vmatpush.msrb.mxu3 %v3366_v60 }
 0x6d5   : > { %2891 = vmatpush.msrb.mxu0 %v3270_v1 }
 0x6d6   : > { %2911 = vmatpush.msrb.mxu1 %v3302_v8 }
 0x733   : > { %v2680_v62 = vpop.f32.mrf.mxu0  ;;  %v2700_v39 = vpop.f32.mrf.mxu1 }
 0x734   : > { %v2681_v54 = vadd.f32 %v2680_v62, %v2655_v57  ;;  %v2701_v59 = vadd.f32 %v2700_v39, %v2656_v6 }
 0x736   : > { %v2720_v61 = vpop.f32.mrf.mxu2  ;;  %v2740_v10 = vpop.f32.mrf.mxu3  ;;  %v2743_v14 = vmax.f32 %v2681_v54, 0.0  ;;  %v2744_v15 = vmax.f32 %v2701_v59, 0.0 }
 0x737   : > { %v2721_v5 = vadd.f32 %v2720_v61, %v2657_v7  ;;  %v2741_v13 = vadd.f32 %v2740_v10, %v2658_v9 }
 0x738   : > { %2892 = vmatmul.f32.vlgmr.msrb.gmra.mxu0 %v2743_v14  ;;  %2912 = vmatmul.f32.vlgmr.msrb.gmra.mxu1 %v2744_v15 }
 0x739   : > { %v2745_v16 = vmax.f32 %v2721_v5, 0.0  ;;  %v2746_v17 = vmax.f32 %v2741_v13, 0.0 }
 0x73b   : > { %2932 = vmatmul.f32.vlgmr.msrb.gmra.mxu2 %v2745_v16  ;;  %2952 = vmatmul.f32.vlgmr.msrb.gmra.mxu3 %v2746_v17 }
 0x7b5   : > { %v2893_v18 = vpop.f32.mrf.mxu0  ;;  %v2913_v20 = vpop.f32.mrf.mxu1 }
 0x7b6   : > { %v2914_v22 = vadd.f32 %v2913_v20, %v2893_v18 }
 0x7be   : > { %v2933_v23 = vpop.f32.mrf.mxu2  ;;  %v2953_v24 = vpop.f32.mrf.mxu3 }
 0x7bf   : > { %v2934_v25 = vadd.f32 %v2933_v23, %v2914_v22 }
 0x7c1   : > { %v2954_v28 = vadd.f32 %v2953_v24, %v2934_v25  ;;  %2961 = sbr.rel (%p3261_p1) target bundleno = 2396 (0x95c), region = 132 }
 0x7c3   : > { %v2956_v51 = vadd.f32 %v2954_v28, %v2747_v26 }
 0x7c5   : > { %2957 = vst [vmem:[#allocation3] sm:$0xff] %v2956_v51 }
 0x7c6   : > { %v3605_v3 = vld [vmem:[%s5029_s14] ss:$0 sm:$0xff]  ;;  %v3997_v35 = vmov 128.0   ;;  %v3020_v0 = vld [vmem:[#allocation18 + $0x70] sm:$0xff]  ;;  %v3018_v44 = vld [vmem:[#allocation18 + $0x60] sm:$0xff] }
 0x7c7   : > { %3609 = vrcp.f32 %v3997_v35  ;;  %v3021_v37 = vld [vmem:[#allocation18 + $0x78] sm:$0xff]  ;;  %v3016_v47 = vld [vmem:[#allocation18 + $0x50] sm:$0xff]  ;;  %v3015_v48 = vld [vmem:[#allocation18 + $0x48] sm:$0xff] }
 0x7c8   : > { %3026 = vmatpush.msra.mxu0 %v3021_v37  ;;  %v3017_v46 = vld [vmem:[#allocation18 + $0x58] sm:$0xff]  ;;  %v3014_v49 = vld [vmem:[#allocation18 + $0x40] sm:$0xff]  ;;  %v3012_v19 = vld [vmem:[#allocation18 + $0x30] sm:$0xff] }
 0x7c9   : > { %v3013_v55 = vld [vmem:[#allocation18 + $0x38] sm:$0xff]  ;;  %v3011_v2 = vld [vmem:[#allocation18 + $0x28] sm:$0xff]  ;;  %v3010_v52 = vld [vmem:[#allocation18 + $0x20] sm:$0xff] }
 0x7ca   : > { %3027 = vmatpush.msra.mxu0 %v3020_v0  ;;  %v3009_v53 = vld [vmem:[#allocation18 + $0x18] sm:$0xff]  ;;  %v3008_v58 = vld [vmem:[#allocation18 + $0x10] sm:$0xff]  ;;  %v3007_v12 = vld [vmem:[#allocation18 + $0x8] sm:$0xff] }
 0x7cb   : > { %v3006_v29 = vld [vmem:[#allocation18] sm:$0xff]  ;;  %v3606_v6 = vld [vmem:[%s5030_s16] ss:$0 sm:$0xff] }
 0x7cc   : > { %v2962_v27 = vld [vmem:[#allocation3] sm:$0xff]  ;;  %v3607_v62 = vld [vmem:[%s5031_s1] ss:$0 sm:$0xff] }
 0x7cd   : > { %v2963_v11 = vadd.f32 %v2962_v27, %v4902_v33  ;;  %v3610_v38 = vpop.eup %3609  ;;  %v3019_v33 = vld [vmem:[#allocation18 + $0x68] sm:$0xff]  ;;  %v3608_v59 = vld [vmem:[%s5032_s8] ss:$0 sm:$0xff] }
 0x7ce   : > { %v2974_v40 = vmul.f32 128.0, %v3610_v38  ;;  %vm2978_vm5 = vweird.f32 %v3610_v38  ;;  %3028 = vmatpush.msra.mxu0 %v3019_v33 }
 0x7cf   : > { %v2968_v34 = vadd.f32 %v3605_v3, %v2963_v11 }
 0x7d0   : > { %v2975_v50 = vsub.f32 1.0, %v2974_v40  ;;  %3029 = vmatpush.msra.mxu0 %v3018_v44 }
 0x7d1   : > { %2971 = vadd.xlane.f32.xlu0 %v2968_v34 }
 0x7d2   : > { %v2976_v41 = vmul.f32 %v3610_v38, %v2975_v50  ;;  %3030 = vmatpush.msra.mxu0 %v3017_v46 }
 0x7d4   : > { %v2977_v42 = vadd.f32 %v3610_v38, %v2976_v41  ;;  %3031 = vmatpush.msra.mxu0 %v3016_v47 }
 0x7d6   : > { %v2979_v31 = vsel %vm2978_vm5, %v3610_v38, %v2977_v42  ;;  %3032 = vmatpush.msra.mxu0 %v3015_v48 }
 0x7d8   : > { %3033 = vmatpush.msra.mxu0 %v3014_v49 }
 0x7da   : > { %3034 = vmatpush.msra.mxu0 %v3013_v55 }
 0x7dc   : > { %3035 = vmatpush.msra.mxu0 %v3012_v19 }
 0x7de   : > { %3036 = vmatpush.msra.mxu0 %v3011_v2 }
 0x7e0   : > { %3037 = vmatpush.msra.mxu0 %v3010_v52 }
 0x7e2   : > { %3038 = vmatpush.msra.mxu0 %v3009_v53 }
 0x7e4   : > { %3039 = vmatpush.msra.mxu0 %v3008_v58 }
 0x7e6   : > { %3040 = vmatpush.msra.mxu0 %v3007_v12 }
 0x7e8   : > { %3041 = vmatpush.msra.mxu0 %v3006_v29 }
 0x844   : > { %v2972_v32 = vpop.xlane.xlu0 %2971 }
 0x845   : > { %v2980_v43 = vmul.f32 %v2979_v31, %v2972_v32 }
 0x847   : > { %v2981_v45 = vsub.f32 %v2968_v34, %v2980_v43 }
 0x849   : > { %v2982_v21 = vmul.f32 %v2981_v45, %v2981_v45 }
 0x84b   : > { %2983 = vadd.xlane.f32.xlu0 %v2982_v21 }
 0x8be   : > { %v2984_v36 = vpop.xlane.xlu0 %2983 }
 0x8bf   : > { %v2985_v56 = vmul.f32 %v2984_v36, %v2979_v31 }
 0x8c1   : > { %v2986_v30 = vadd.f32 1e-05, %v2985_v56 }
 0x8c3   : > { %3611 = vrsqrt.f32 %v2986_v30  ;;  %vm2993_vm7 = vweird.f32 %v2986_v30 }
 0x8c9   : > { %v3612_v63 = vpop.eup %3611 }
 0x8ca   : > { %v2988_v60 = vmul.f32 %v3612_v63, %v2986_v30  ;;  %vm2994_vm6 = vweird.f32 %v3612_v63 }
 0x8cb   : > { %vm2995_vm8 = vmor %vm2993_vm7, %vm2994_vm6 }
 0x8cc   : > { %v2989_v1 = vmul.f32 %v3612_v63, %v2988_v60 }
 0x8ce   : > { %v2990_v8 = vmul.f32 0.5, %v2989_v1 }
 0x8d0   : > { %v2991_v4 = vsub.f32 1.5, %v2990_v8 }
 0x8d2   : > { %v2992_v57 = vmul.f32 %v3612_v63, %v2991_v4 }
 0x8d4   : > { %v2996_v7 = vsel %vm2995_vm8, %v3612_v63, %v2992_v57 }
 0x8d5   : > { %v2997_v9 = vmul.f32 %v2996_v7, %v2981_v45 }
 0x8d7   : > { %v3001_v39 = vmul.f32 %v3606_v6, %v2997_v9 }
 0x8d9   : > { %v3005_v54 = vadd.f32 %v3607_v62, %v3001_v39 }
 0x8db   : > { %3042 = vmatmul.f32.vlgmr.msra.gmra.mxu0 %v3005_v54 }
 0x958   : > { %v3043_v61 = vpop.f32.mrf.mxu0 }
 0x959   : > { %v3044_v10 = vadd.f32 %v3608_v59, %v3043_v61 }
 0x95b   : > { %3046 = vst [vmem:[#allocation19] sm:$0xff] %v3044_v10 }
 0x95c PF: > { %p3503_p3 = scmp.eq.s32.totalorder %s4113_s18, 3  ;;  %s3998_s29 = smov [#allocation19]  }
 0x95d   : > { %s3053_s24 = sshll.u32 %s3998_s29, 4  ;;  %s5033_s27 = sld [smem:[#allocation40_spill]]  ;;  %s3054_s24 = int_to_ptr.vmem [resolvable:$true] %s3053_s24 }
 0x963   : > { %s3055_s22 = sshll.u32 %s5033_s27, 4  ;;  %s3056_s22 = int_to_ptr.hbm [resolvable:$true] %s3055_s22 }
 0x964   : > { %3458 = dma.vmem_to_hbm [thread:$0]  (%p3503_p3), %s3054_s24, 128, %s3056_s22, [#allocation6]  }
 0x965   : > { %3952 = dma.done.wait (%p3503_p3), [#allocation6], 128  }
 0x966   : > { %3954 = vsyncadd (%p3503_p3), [#allocation6], 4294967168 }
 0x967 PF: > { %s5034_s27 = sld [smem:[#allocation27_spill]]  ;;  %s5036_s24 = smov %s3961_s25 }
 0x968   : > { %s5035_s19 = sld [smem:[#allocation28_spill]]  ;;  %s5037_s25 = smov %s3965_s26 }
 0x96d   : > { %p34_p4 = scmp.ge.s32.totalorder %s5034_s27, 6  }
 0x96e   : > { %s5038_s26 = smov %s5035_s19 }
 0x96f   :  { %36 = sbr.rel (!%p34_p4) target bundleno = 22 (0x16), region = 182 }
 0x974   :  { %3069 = vsyncpa [#allocation5], 1 }
 0x975   :  { %3071 = vsyncpa [#allocation5 + $0x1], 1 }
 0x976   :  { %3072 = vsyncpa [#allocation8], 1 }
 0x977   :  { %3073 = vsyncpa [#allocation11], 1 }
 0x978   :  { %3074 = vsyncpa [#allocation14], 1 }
 0x979   :  { %3076 = vsyncpa [#allocation14 + $0x1], 1 }
 0x97a   :  { %3077 = vsyncpa [#allocation17], 1 }
 0x97b   :  { %3079 = vsyncpa [#allocation17 + $0x1], 1 }
 0x97c   :  { %3080 = vsyncpa [#allocation6], 1 }
 0x97d   :  { %3082 = vsyncpa [#allocation6 + $0x1], 1 }

</bundles_post_ra>
